<compile_context>
chip_gen: v7x
topology: tpu7x:2x2x1
jax: 0.10.0
libtpu: 0.0.40
codegen_flags: <defaults>
</compile_context>

<pallas_src>
import functools

import numpy as np
import jax
import jax.numpy as jnp
from jax import lax
from jax.experimental import pallas as pl
from jax.experimental.pallas import tpu as pltpu


def _downblock_kernel(x_ref, w_ref, aff_ref, o_ref, y_scr,
                      *, H, W, C_in, C_out, eps, Nb):
    P = W + 2                  # padded row width
    S = H * P                  # flat spatial length covering all valid output rows
    Ho, Wo = H // 2, W // 2

    # ---- Conv2d(3x3, pad=1), accumulated directly into the f32 VMEM scratch ------
    def tap(k):
        ky, kx = divmod(k, 3)
        return x_ref[:, pl.ds(ky * P + kx, S), :]          # (Nb, S, C_in) bf16

    if C_in < 32:
        # Tiny C_in: single matmul with K = 9*C_in (lane concat is cheap here).
        patch = jnp.concatenate([tap(k) for k in range(9)], axis=-1)
        y_scr[...] = jnp.dot(patch.reshape(Nb * S, 9 * C_in), w_ref[...],
                             preferred_element_type=jnp.float32
                             ).reshape(Nb, S, C_out)
    else:
        # Larger C_in: 9 accumulating matmuls; no 9x patch materialization.
        y_scr[...] = jnp.dot(tap(0).reshape(Nb * S, C_in), w_ref[pl.ds(0, C_in), :],
                             preferred_element_type=jnp.float32
                             ).reshape(Nb, S, C_out)
        for k in range(1, 9):
            y_scr[...] += jnp.dot(tap(k).reshape(Nb * S, C_in),
                                  w_ref[pl.ds(k * C_in, C_in), :],
                                  preferred_element_type=jnp.float32
                                  ).reshape(Nb, S, C_out)

    # NOTE: the Conv2d bias is intentionally NOT added: a per-channel constant added
    # before InstanceNorm is exactly cancelled by the mean subtraction.

    # ---- InstanceNorm2d stats in one pass: sum & sum-of-squares -------------------
    # Junk columns (flat col index in {W, W+1} of each padded row) hold wrapped
    # garbage; their contribution is removed with two small strided reads rather
    # than a full-tensor mask multiply.
    a = y_scr[...]                                           # (Nb, S, C_out) f32
    s1 = jnp.sum(a, axis=1, keepdims=True)
    s2 = jnp.sum(a * a, axis=1, keepdims=True)
    j0 = y_scr[:, pl.ds(W, H, stride=P), :]                  # (Nb, H, C_out)
    j1 = y_scr[:, pl.ds(W + 1, H, stride=P), :]
    s1 = s1 - jnp.sum(j0, axis=1, keepdims=True) - jnp.sum(j1, axis=1, keepdims=True)
    s2 = (s2 - jnp.sum(j0 * j0, axis=1, keepdims=True)
             - jnp.sum(j1 * j1, axis=1, keepdims=True))

    inv_n = 1.0 / float(H * W)
    mean = s1 * inv_n                                        # (Nb, 1, C_out)
    var = jnp.maximum(s2 * inv_n - mean * mean, 0.0)
    # eps keeps zero-variance (e.g. zero-padded batch) samples finite; do not remove.
    inv = lax.rsqrt(var + eps)

    # gamma/beta arrive pre-scaled by the 0.25 AvgPool factor (ReLU is positively
    # homogeneous), so the pool below needs no multiply.
    aff = aff_ref[...]                                       # (2, C_out) f32
    g = aff[0:1, :][None]                                    # (1, 1, C_out) = 0.25*gamma
    b = aff[1:2, :][None]                                    # (1, 1, C_out) = 0.25*beta
    scale = inv * g                                          # (Nb, 1, C_out)
    shift = b - mean * scale

    # ---- normalize + affine + ReLU, in place in the scratch -----------------------
    y_scr[...] = jnp.maximum(y_scr[...] * scale + shift, 0.0)

    # ---- AvgPool2d(2,2): strided reads; 0.25 already folded into gamma/beta -------
    # Output (oy, ox) sums flat positions {2oy*P+2ox, +1, +P, +P+1}; junk columns
    # (col >= W) are never selected, so no masking is needed here.
    for oy in range(Ho):
        r0 = 2 * oy * P
        r1 = r0 + P
        win = (y_scr[:, pl.ds(r0,     Wo, stride=2), :] +
               y_scr[:, pl.ds(r0 + 1, Wo, stride=2), :] +
               y_scr[:, pl.ds(r1,     Wo, stride=2), :] +
               y_scr[:, pl.ds(r1 + 1, Wo, stride=2), :])
        o_ref[:, pl.ds(oy * Wo, Wo), :] = win.astype(o_ref.dtype)


def _pick_block_and_vmem(N, Sin, S, C_in, C_out, Ho, Wo):
    """Generation-aware batch-block size and scoped-VMEM limit."""
    try:
        cap = int(pltpu.get_tpu_info().vmem_capacity_bytes)
    except Exception:
        cap = 64 * 2**20                      # conservative (v7x) fallback
    budget = max(32 * 2**20, min(int(0.80 * cap), 112 * 2**20))

    def rnd(c, m=128):                        # lane padding of the minor dim in VMEM
        return -(-c // m) * m

    per_sample = (2 * Sin * rnd(C_in) * 2          # double-buffered bf16 input block
                  + S * rnd(C_out) * 4             # f32 conv/activation scratch
                  + 2 * S * rnd(C_out) * 4         # streamed matmul/elementwise temporaries
                  + 2 * Ho * Wo * rnd(C_out) * 4)  # double-buffered output block
    fixed = rnd(9 * C_in, 8) * rnd(C_out) * 2 + 8 * rnd(C_out) * 4 + (1 << 20)

    nb_mem = max(1, (budget - fixed) // max(1, per_sample))
    # Keep >= 2 grid steps when the batch allows so both TensorCores (v7x megacore /
    # dimension_semantics="parallel") get grid slices.
    nb = int(max(1, min(nb_mem, max(1, N // 2))))
    return nb, int(budget)


def down_block_2d(x_nchw, w_hwio, bias, gamma, beta, eps=1e-5, nb=None):
    # TODO(synk): groups>1 (grouped conv) not implemented; assumes groups=1 (module default).
    # NOTE: `bias` is accepted for interface parity but is mathematically a no-op here:
    # InstanceNorm's mean subtraction cancels any per-channel constant added by the conv.
    del bias
    N, C_in, H, W = x_nchw.shape
    C_out = w_hwio.shape[-1]
    assert H % 2 == 0 and W % 2 == 0, "AvgPool2d(2,2) expects even spatial dims"
    Ho, Wo = H // 2, W // 2
    P = W + 2                 # padded row width
    S = H * P                 # flat length covering all valid rows
    Sin = (H + 3) * P         # extra bottom rows so shifted slices never go OOB

    nb_auto, vmem_limit = _pick_block_and_vmem(N, Sin, S, C_in, C_out, Ho, Wo)
    if nb is None:
        nb = nb_auto
    Ng = -(-N // nb)
    N_pad = Ng * nb

    # NCHW -> NHWC, bf16 cast fused before the pads (pads then move half the bytes).
    # NOTE: bf16 conv operands (f32 accumulation) deviate from PyTorch's f32 conv;
    # callers that can provide/consume NHWC directly should do so to avoid the
    # transpose HBM passes.
    x_nhwc = jnp.transpose(x_nchw, (0, 2, 3, 1)).astype(jnp.bfloat16)
    if N_pad != N:
        # Zero-padded batch samples hit var=0 -> rsqrt(eps); finite and discarded.
        x_nhwc = jnp.pad(x_nhwc, ((0, N_pad - N), (0, 0), (0, 0), (0, 0)))
    x_pad = jnp.pad(x_nhwc, ((0, 0), (1, 2), (1, 1), (0, 0)))
    x_flat = x_pad.reshape(N_pad, Sin, C_in)

    # Weight rows ordered as (ky*3+kx)*C_in + ci, matching the in-kernel tap order.
    w_flat = w_hwio.reshape(9 * C_in, C_out).astype(jnp.bfloat16)
    # Fold the 0.25 AvgPool factor into the affine parameters (ReLU is pos. homogeneous).
    affine = (0.25 * jnp.stack([gamma, beta])).astype(jnp.float32)     # (2, C_out)

    kern = functools.partial(_downblock_kernel, H=H, W=W, C_in=C_in,
                             C_out=C_out, eps=float(eps), Nb=nb)

    out_flat = pl.pallas_call(
        kern,
        out_shape=jax.ShapeDtypeStruct((N_pad, Ho * Wo, C_out), x_nchw.dtype),
        grid_spec=pltpu.PrefetchScalarGridSpec(
            num_scalar_prefetch=0,
            grid=(Ng,),
            in_specs=[
                pl.BlockSpec((nb, Sin, C_in), lambda n: (n, 0, 0)),
                pl.BlockSpec((9 * C_in, C_out), lambda n: (0, 0)),
                pl.BlockSpec((2, C_out), lambda n: (0, 0)),
            ],
            out_specs=pl.BlockSpec((nb, Ho * Wo, C_out), lambda n: (n, 0, 0)),
            scratch_shapes=[pltpu.VMEM((nb, S, C_out), jnp.float32)],
        ),
        compiler_params=pltpu.CompilerParams(
            dimension_semantics=("parallel",),
            vmem_limit_bytes=vmem_limit,
        ),
    )(x_flat, w_flat, affine)

    out = out_flat[:N].reshape(N, Ho, Wo, C_out)
    return jnp.transpose(out, (0, 3, 1, 2))               # back to NCHW


def down_block_2d_ref(x_nchw, w_hwio, bias, gamma, beta, eps=1e-5):
    """Pure-JAX f32 reference matching the PyTorch forward semantics."""
    x = jnp.transpose(x_nchw, (0, 2, 3, 1))
    conv = lax.conv_general_dilated(
        x, w_hwio, window_strides=(1, 1), padding=((1, 1), (1, 1)),
        dimension_numbers=("NHWC", "HWIO", "NHWC"))
    conv = conv + bias.reshape(1, 1, 1, -1)
    mean = jnp.mean(conv, axis=(1, 2), keepdims=True)
    var = jnp.mean((conv - mean) ** 2, axis=(1, 2), keepdims=True)
    y = (conv - mean) * lax.rsqrt(var + eps)
    y = y * gamma.reshape(1, 1, 1, -1) + beta.reshape(1, 1, 1, -1)
    y = jnp.maximum(y, 0.0)
    N, H, W, C = y.shape
    y = y.reshape(N, H // 2, 2, W // 2, 2, C).mean(axis=(2, 4))
    return jnp.transpose(y, (0, 3, 1, 2))


def _run_case(key, N, C_in, C_out, H, W, atol):
    kx, kw, kb, kg, kbe = jax.random.split(key, 5)
    x = jax.random.normal(kx, (N, C_in, H, W), jnp.float32)
    w_hwio = jax.random.normal(kw, (3, 3, C_in, C_out), jnp.float32) * 0.1
    bias = jax.random.normal(kb, (C_out,), jnp.float32) * 0.1
    gamma = 1.0 + 0.1 * jax.random.normal(kg, (C_out,), jnp.float32)
    beta = 0.1 * jax.random.normal(kbe, (C_out,), jnp.float32)

    out = jax.block_until_ready(down_block_2d(x, w_hwio, bias, gamma, beta))
    ref = jax.block_until_ready(down_block_2d_ref(x, w_hwio, bias, gamma, beta))

    assert out.shape == (N, C_out, H // 2, W // 2), out.shape
    # Tolerance accounts for bf16 conv operands (f32 accumulation) vs. the f32 reference.
    np.testing.assert_allclose(np.asarray(out), np.asarray(ref),
                               rtol=2e-2, atol=atol)


if __name__ == "__main__":
    key = jax.random.PRNGKey(0)
    k1, k2 = jax.random.split(key)

    # Primary small case (exercises the tiny-C_in concat conv path).
    _run_case(k1, N=2, C_in=4, C_out=8, H=16, W=16, atol=2e-2)
    # Secondary case (exercises the 9 accumulating-matmul conv path, C_in >= 32).
    _run_case(k2, N=2, C_in=64, C_out=32, H=8, W=8, atol=3e-2)

    print("KERNEL_OK")
</pallas_src>

<mosaic_0001>
module attributes {stable_mosaic.version = 11 : i64} {
  func.func @_downblock_kernel(%arg0: i32, %arg1: memref<1x342x4xbf16, #tpu.memory_space<vmem>>, %arg2: memref<36x8xbf16, #tpu.memory_space<vmem>>, %arg3: memref<2x8xf32, #tpu.memory_space<vmem>>, %arg4: memref<1x64x8xf32, #tpu.memory_space<vmem>>, %arg5: memref<1x288x8xf32, #tpu.memory_space<vmem>>) attributes {dimension_semantics = [#tpu.dimension_semantics<parallel>], iteration_bounds = array<i64: 2>, scalar_prefetch = 0 : i64, scratch_operands = 1 : i64, tpu.core_type = #tpu.core_type<tc>, window_params = [{transform_indices = @transform_0, window_bounds = array<i64: 1, 342, 4>}, {pipeline_mode = #tpu.pipeline_mode<synchronous>, transform_indices = @transform_1, window_bounds = array<i64: 36, 8>}, {pipeline_mode = #tpu.pipeline_mode<synchronous>, transform_indices = @transform_2, window_bounds = array<i64: 2, 8>}, {transform_indices = @transform_3, window_bounds = array<i64: 1, 64, 8>}]} {
    %c0 = arith.constant 0 : index
    %c0_0 = arith.constant 0 : index
    %c0_1 = arith.constant 0 : index
    %0 = vector.load %arg1[%c0, %c0_0, %c0_1] : memref<1x342x4xbf16, #tpu.memory_space<vmem>>, vector<1x288x4xbf16>
    %c0_2 = arith.constant 0 : index
    %c1 = arith.constant 1 : index
    %c0_3 = arith.constant 0 : index
    %1 = vector.load %arg1[%c0_2, %c1, %c0_3] : memref<1x342x4xbf16, #tpu.memory_space<vmem>>, vector<1x288x4xbf16>
    %c0_4 = arith.constant 0 : index
    %c2 = arith.constant 2 : index
    %c0_5 = arith.constant 0 : index
    %2 = vector.load %arg1[%c0_4, %c2, %c0_5] : memref<1x342x4xbf16, #tpu.memory_space<vmem>>, vector<1x288x4xbf16>
    %c0_6 = arith.constant 0 : index
    %c18 = arith.constant 18 : index
    %c0_7 = arith.constant 0 : index
    %3 = vector.load %arg1[%c0_6, %c18, %c0_7] : memref<1x342x4xbf16, #tpu.memory_space<vmem>>, vector<1x288x4xbf16>
    %c0_8 = arith.constant 0 : index
    %c19 = arith.constant 19 : index
    %c0_9 = arith.constant 0 : index
    %4 = vector.load %arg1[%c0_8, %c19, %c0_9] : memref<1x342x4xbf16, #tpu.memory_space<vmem>>, vector<1x288x4xbf16>
    %c0_10 = arith.constant 0 : index
    %c20 = arith.constant 20 : index
    %c0_11 = arith.constant 0 : index
    %5 = vector.load %arg1[%c0_10, %c20, %c0_11] : memref<1x342x4xbf16, #tpu.memory_space<vmem>>, vector<1x288x4xbf16>
    %c0_12 = arith.constant 0 : index
    %c36 = arith.constant 36 : index
    %c0_13 = arith.constant 0 : index
    %6 = vector.load %arg1[%c0_12, %c36, %c0_13] : memref<1x342x4xbf16, #tpu.memory_space<vmem>>, vector<1x288x4xbf16>
    %c0_14 = arith.constant 0 : index
    %c37 = arith.constant 37 : index
    %c0_15 = arith.constant 0 : index
    %7 = vector.load %arg1[%c0_14, %c37, %c0_15] : memref<1x342x4xbf16, #tpu.memory_space<vmem>>, vector<1x288x4xbf16>
    %c0_16 = arith.constant 0 : index
    %c38 = arith.constant 38 : index
    %c0_17 = arith.constant 0 : index
    %8 = vector.load %arg1[%c0_16, %c38, %c0_17] : memref<1x342x4xbf16, #tpu.memory_space<vmem>>, vector<1x288x4xbf16>
    %9 = tpu.concatenate %0, %1, %2, %3, %4, %5, %6, %7, %8 in 2 : vector<1x288x4xbf16>, vector<1x288x4xbf16>, vector<1x288x4xbf16>, vector<1x288x4xbf16>, vector<1x288x4xbf16>, vector<1x288x4xbf16>, vector<1x288x4xbf16>, vector<1x288x4xbf16>, vector<1x288x4xbf16> -> vector<1x288x36xbf16>
    %10 = vector.shape_cast %9 : vector<1x288x36xbf16> to vector<288x36xbf16>
    %c0_18 = arith.constant 0 : index
    %c0_19 = arith.constant 0 : index
    %11 = vector.load %arg2[%c0_18, %c0_19] : memref<36x8xbf16, #tpu.memory_space<vmem>>, vector<36x8xbf16>
    %cst = arith.constant dense<0.000000e+00> : vector<288x8xf32>
    %12 = tpu.matmul %10, %11, %cst {dimension_numbers = #tpu.dot_dimension_numbers<[1], [0], [0], [1], [0, 0, 1, 1], [], []>} : vector<288x36xbf16>, vector<36x8xbf16>, vector<288x8xf32> -> vector<288x8xf32>
    %13 = vector.shape_cast %12 : vector<288x8xf32> to vector<1x288x8xf32>
    %c0_20 = arith.constant 0 : index
    %c0_21 = arith.constant 0 : index
    %c0_22 = arith.constant 0 : index
    %14 = vector.load %arg5[%c0_20, %c0_21, %c0_22] : memref<1x288x8xf32, #tpu.memory_space<vmem>>, vector<1x288x8xf32>
    tpu.vector_store %arg5[%c0_20, %c0_21, %c0_22], %13 {strides = array<i32>} : memref<1x288x8xf32, #tpu.memory_space<vmem>>, vector<1x288x8xf32>,
    %c0_23 = arith.constant 0 : index
    %c0_24 = arith.constant 0 : index
    %c0_25 = arith.constant 0 : index
    %15 = vector.load %arg5[%c0_23, %c0_24, %c0_25] : memref<1x288x8xf32, #tpu.memory_space<vmem>>, vector<1x288x8xf32>
    %cst_26 = arith.constant dense<0.000000e+00> : vector<1x8xf32>
    %16 = vector.multi_reduction <add>, %15, %cst_26 [1] : vector<1x288x8xf32> to vector<1x8xf32>
    %17 = vector.shape_cast %16 : vector<1x8xf32> to vector<1x1x8xf32>
    %18 = arith.mulf %15, %15 : vector<1x288x8xf32>
    %cst_27 = arith.constant dense<0.000000e+00> : vector<1x8xf32>
    %19 = vector.multi_reduction <add>, %18, %cst_27 [1] : vector<1x288x8xf32> to vector<1x8xf32>
    %20 = vector.shape_cast %19 : vector<1x8xf32> to vector<1x1x8xf32>
    %c0_28 = arith.constant 0 : index
    %c16 = arith.constant 16 : index
    %c0_29 = arith.constant 0 : index
    %21 = tpu.strided_load %arg5[%c0_28, %c16, %c0_29] {strides = array<i32: 1, 18, 1>} : memref<1x288x8xf32, #tpu.memory_space<vmem>>, vector<1x16x8xf32>
    %c0_30 = arith.constant 0 : index
    %c17 = arith.constant 17 : index
    %c0_31 = arith.constant 0 : index
    %22 = tpu.strided_load %arg5[%c0_30, %c17, %c0_31] {strides = array<i32: 1, 18, 1>} : memref<1x288x8xf32, #tpu.memory_space<vmem>>, vector<1x16x8xf32>
    %cst_32 = arith.constant dense<0.000000e+00> : vector<1x8xf32>
    %23 = vector.multi_reduction <add>, %21, %cst_32 [1] : vector<1x16x8xf32> to vector<1x8xf32>
    %24 = vector.shape_cast %23 : vector<1x8xf32> to vector<1x1x8xf32>
    %25 = arith.subf %17, %24 : vector<1x1x8xf32>
    %cst_33 = arith.constant dense<0.000000e+00> : vector<1x8xf32>
    %26 = vector.multi_reduction <add>, %22, %cst_33 [1] : vector<1x16x8xf32> to vector<1x8xf32>
    %27 = vector.shape_cast %26 : vector<1x8xf32> to vector<1x1x8xf32>
    %28 = arith.subf %25, %27 : vector<1x1x8xf32>
    %29 = arith.mulf %21, %21 : vector<1x16x8xf32>
    %cst_34 = arith.constant dense<0.000000e+00> : vector<1x8xf32>
    %30 = vector.multi_reduction <add>, %29, %cst_34 [1] : vector<1x16x8xf32> to vector<1x8xf32>
    %31 = vector.shape_cast %30 : vector<1x8xf32> to vector<1x1x8xf32>
    %32 = arith.subf %20, %31 : vector<1x1x8xf32>
    %33 = arith.mulf %22, %22 : vector<1x16x8xf32>
    %cst_35 = arith.constant dense<0.000000e+00> : vector<1x8xf32>
    %34 = vector.multi_reduction <add>, %33, %cst_35 [1] : vector<1x16x8xf32> to vector<1x8xf32>
    %35 = vector.shape_cast %34 : vector<1x8xf32> to vector<1x1x8xf32>
    %36 = arith.subf %32, %35 : vector<1x1x8xf32>
    %cst_36 = arith.constant 3.906250e-03 : f32
    %37 = vector.broadcast %cst_36 : f32 to vector<1x1x8xf32>
    %38 = arith.mulf %28, %37 : vector<1x1x8xf32>
    %cst_37 = arith.constant 3.906250e-03 : f32
    %39 = vector.broadcast %cst_37 : f32 to vector<1x1x8xf32>
    %40 = arith.mulf %36, %39 : vector<1x1x8xf32>
    %41 = arith.mulf %38, %38 : vector<1x1x8xf32>
    %42 = arith.subf %40, %41 : vector<1x1x8xf32>
    %cst_38 = arith.constant 0.000000e+00 : f32
    %43 = vector.broadcast %cst_38 : f32 to vector<1x1x8xf32>
    %44 = arith.maximumf %42, %43 : vector<1x1x8xf32>
    %cst_39 = arith.constant 9.99999974E-6 : f32
    %45 = vector.broadcast %cst_39 : f32 to vector<1x1x8xf32>
    %46 = arith.addf %44, %45 : vector<1x1x8xf32>
    %47 = math.rsqrt %46 : vector<1x1x8xf32>
    %c0_40 = arith.constant 0 : index
    %c0_41 = arith.constant 0 : index
    %48 = vector.load %arg3[%c0_40, %c0_41] : memref<2x8xf32, #tpu.memory_space<vmem>>, vector<2x8xf32>
    %49 = vector.extract_strided_slice %48 {offsets = [0, 0], sizes = [1, 8], strides = [1, 1]} : vector<2x8xf32> to vector<1x8xf32>
    %50 = vector.shape_cast %49 : vector<1x8xf32> to vector<1x1x8xf32>
    %51 = vector.extract_strided_slice %48 {offsets = [1, 0], sizes = [1, 8], strides = [1, 1]} : vector<2x8xf32> to vector<1x8xf32>
    %52 = vector.shape_cast %51 : vector<1x8xf32> to vector<1x1x8xf32>
    %53 = arith.mulf %47, %50 : vector<1x1x8xf32>
    %54 = arith.mulf %38, %53 : vector<1x1x8xf32>
    %55 = arith.subf %52, %54 : vector<1x1x8xf32>
    %c0_42 = arith.constant 0 : index
    %c0_43 = arith.constant 0 : index
    %c0_44 = arith.constant 0 : index
    %56 = vector.load %arg5[%c0_42, %c0_43, %c0_44] : memref<1x288x8xf32, #tpu.memory_space<vmem>>, vector<1x288x8xf32>
    %57 = vector.broadcast %53 : vector<1x1x8xf32> to vector<1x288x8xf32>
    %58 = arith.mulf %56, %57 : vector<1x288x8xf32>
    %59 = vector.broadcast %55 : vector<1x1x8xf32> to vector<1x288x8xf32>
    %60 = arith.addf %58, %59 : vector<1x288x8xf32>
    %cst_45 = arith.constant 0.000000e+00 : f32
    %61 = vector.broadcast %cst_45 : f32 to vector<1x288x8xf32>
    %62 = arith.maximumf %60, %61 : vector<1x288x8xf32>
    %c0_46 = arith.constant 0 : index
    %c0_47 = arith.constant 0 : index
    %c0_48 = arith.constant 0 : index
    %63 = vector.load %arg5[%c0_46, %c0_47, %c0_48] : memref<1x288x8xf32, #tpu.memory_space<vmem>>, vector<1x288x8xf32>
    tpu.vector_store %arg5[%c0_46, %c0_47, %c0_48], %62 {strides = array<i32>} : memref<1x288x8xf32, #tpu.memory_space<vmem>>, vector<1x288x8xf32>,
    %c0_49 = arith.constant 0 : index
    %c0_50 = arith.constant 0 : index
    %c0_51 = arith.constant 0 : index
    %64 = tpu.strided_load %arg5[%c0_49, %c0_50, %c0_51] {strides = array<i32: 1, 2, 1>} : memref<1x288x8xf32, #tpu.memory_space<vmem>>, vector<1x8x8xf32>
    %c0_52 = arith.constant 0 : index
    %c1_53 = arith.constant 1 : index
    %c0_54 = arith.constant 0 : index
    %65 = tpu.strided_load %arg5[%c0_52, %c1_53, %c0_54] {strides = array<i32: 1, 2, 1>} : memref<1x288x8xf32, #tpu.memory_space<vmem>>, vector<1x8x8xf32>
    %66 = arith.addf %64, %65 : vector<1x8x8xf32>
    %c0_55 = arith.constant 0 : index
    %c18_56 = arith.constant 18 : index
    %c0_57 = arith.constant 0 : index
    %67 = tpu.strided_load %arg5[%c0_55, %c18_56, %c0_57] {strides = array<i32: 1, 2, 1>} : memref<1x288x8xf32, #tpu.memory_space<vmem>>, vector<1x8x8xf32>
    %68 = arith.addf %66, %67 : vector<1x8x8xf32>
    %c0_58 = arith.constant 0 : index
    %c19_59 = arith.constant 19 : index
    %c0_60 = arith.constant 0 : index
    %69 = tpu.strided_load %arg5[%c0_58, %c19_59, %c0_60] {strides = array<i32: 1, 2, 1>} : memref<1x288x8xf32, #tpu.memory_space<vmem>>, vector<1x8x8xf32>
    %70 = arith.addf %68, %69 : vector<1x8x8xf32>
    %c0_61 = arith.constant 0 : index
    %c0_62 = arith.constant 0 : index
    %c0_63 = arith.constant 0 : index
    %71 = vector.load %arg4[%c0_61, %c0_62, %c0_63] : memref<1x64x8xf32, #tpu.memory_space<vmem>>, vector<1x8x8xf32>
    tpu.vector_store %arg4[%c0_61, %c0_62, %c0_63], %70 {strides = array<i32>} : memref<1x64x8xf32, #tpu.memory_space<vmem>>, vector<1x8x8xf32>,
    %c0_64 = arith.constant 0 : index
    %c36_65 = arith.constant 36 : index
    %c0_66 = arith.constant 0 : index
    %72 = tpu.strided_load %arg5[%c0_64, %c36_65, %c0_66] {strides = array<i32: 1, 2, 1>} : memref<1x288x8xf32, #tpu.memory_space<vmem>>, vector<1x8x8xf32>
    %c0_67 = arith.constant 0 : index
    %c37_68 = arith.constant 37 : index
    %c0_69 = arith.constant 0 : index
    %73 = tpu.strided_load %arg5[%c0_67, %c37_68, %c0_69] {strides = array<i32: 1, 2, 1>} : memref<1x288x8xf32, #tpu.memory_space<vmem>>, vector<1x8x8xf32>
    %74 = arith.addf %72, %73 : vector<1x8x8xf32>
    %c0_70 = arith.constant 0 : index
    %c54 = arith.constant 54 : index
    %c0_71 = arith.constant 0 : index
    %75 = tpu.strided_load %arg5[%c0_70, %c54, %c0_71] {strides = array<i32: 1, 2, 1>} : memref<1x288x8xf32, #tpu.memory_space<vmem>>, vector<1x8x8xf32>
    %76 = arith.addf %74, %75 : vector<1x8x8xf32>
    %c0_72 = arith.constant 0 : index
    %c55 = arith.constant 55 : index
    %c0_73 = arith.constant 0 : index
    %77 = tpu.strided_load %arg5[%c0_72, %c55, %c0_73] {strides = array<i32: 1, 2, 1>} : memref<1x288x8xf32, #tpu.memory_space<vmem>>, vector<1x8x8xf32>
    %78 = arith.addf %76, %77 : vector<1x8x8xf32>
    %c0_74 = arith.constant 0 : index
    %c8 = arith.constant 8 : index
    %c0_75 = arith.constant 0 : index
    %79 = vector.load %arg4[%c0_74, %c8, %c0_75] : memref<1x64x8xf32, #tpu.memory_space<vmem>>, vector<1x8x8xf32>
    tpu.vector_store %arg4[%c0_74, %c8, %c0_75], %78 {strides = array<i32>} : memref<1x64x8xf32, #tpu.memory_space<vmem>>, vector<1x8x8xf32>,
    %c0_76 = arith.constant 0 : index
    %c72 = arith.constant 72 : index
    %c0_77 = arith.constant 0 : index
    %80 = tpu.strided_load %arg5[%c0_76, %c72, %c0_77] {strides = array<i32: 1, 2, 1>} : memref<1x288x8xf32, #tpu.memory_space<vmem>>, vector<1x8x8xf32>
    %c0_78 = arith.constant 0 : index
    %c73 = arith.constant 73 : index
    %c0_79 = arith.constant 0 : index
    %81 = tpu.strided_load %arg5[%c0_78, %c73, %c0_79] {strides = array<i32: 1, 2, 1>} : memref<1x288x8xf32, #tpu.memory_space<vmem>>, vector<1x8x8xf32>
    %82 = arith.addf %80, %81 : vector<1x8x8xf32>
    %c0_80 = arith.constant 0 : index
    %c90 = arith.constant 90 : index
    %c0_81 = arith.constant 0 : index
    %83 = tpu.strided_load %arg5[%c0_80, %c90, %c0_81] {strides = array<i32: 1, 2, 1>} : memref<1x288x8xf32, #tpu.memory_space<vmem>>, vector<1x8x8xf32>
    %84 = arith.addf %82, %83 : vector<1x8x8xf32>
    %c0_82 = arith.constant 0 : index
    %c91 = arith.constant 91 : index
    %c0_83 = arith.constant 0 : index
    %85 = tpu.strided_load %arg5[%c0_82, %c91, %c0_83] {strides = array<i32: 1, 2, 1>} : memref<1x288x8xf32, #tpu.memory_space<vmem>>, vector<1x8x8xf32>
    %86 = arith.addf %84, %85 : vector<1x8x8xf32>
    %c0_84 = arith.constant 0 : index
    %c16_85 = arith.constant 16 : index
    %c0_86 = arith.constant 0 : index
    %87 = vector.load %arg4[%c0_84, %c16_85, %c0_86] : memref<1x64x8xf32, #tpu.memory_space<vmem>>, vector<1x8x8xf32>
    tpu.vector_store %arg4[%c0_84, %c16_85, %c0_86], %86 {strides = array<i32>} : memref<1x64x8xf32, #tpu.memory_space<vmem>>, vector<1x8x8xf32>,
    %c0_87 = arith.constant 0 : index
    %c108 = arith.constant 108 : index
    %c0_88 = arith.constant 0 : index
    %88 = tpu.strided_load %arg5[%c0_87, %c108, %c0_88] {strides = array<i32: 1, 2, 1>} : memref<1x288x8xf32, #tpu.memory_space<vmem>>, vector<1x8x8xf32>
    %c0_89 = arith.constant 0 : index
    %c109 = arith.constant 109 : index
    %c0_90 = arith.constant 0 : index
    %89 = tpu.strided_load %arg5[%c0_89, %c109, %c0_90] {strides = array<i32: 1, 2, 1>} : memref<1x288x8xf32, #tpu.memory_space<vmem>>, vector<1x8x8xf32>
    %90 = arith.addf %88, %89 : vector<1x8x8xf32>
    %c0_91 = arith.constant 0 : index
    %c126 = arith.constant 126 : index
    %c0_92 = arith.constant 0 : index
    %91 = tpu.strided_load %arg5[%c0_91, %c126, %c0_92] {strides = array<i32: 1, 2, 1>} : memref<1x288x8xf32, #tpu.memory_space<vmem>>, vector<1x8x8xf32>
    %92 = arith.addf %90, %91 : vector<1x8x8xf32>
    %c0_93 = arith.constant 0 : index
    %c127 = arith.constant 127 : index
    %c0_94 = arith.constant 0 : index
    %93 = tpu.strided_load %arg5[%c0_93, %c127, %c0_94] {strides = array<i32: 1, 2, 1>} : memref<1x288x8xf32, #tpu.memory_space<vmem>>, vector<1x8x8xf32>
    %94 = arith.addf %92, %93 : vector<1x8x8xf32>
    %c0_95 = arith.constant 0 : index
    %c24 = arith.constant 24 : index
    %c0_96 = arith.constant 0 : index
    %95 = vector.load %arg4[%c0_95, %c24, %c0_96] : memref<1x64x8xf32, #tpu.memory_space<vmem>>, vector<1x8x8xf32>
    tpu.vector_store %arg4[%c0_95, %c24, %c0_96], %94 {strides = array<i32>} : memref<1x64x8xf32, #tpu.memory_space<vmem>>, vector<1x8x8xf32>,
    %c0_97 = arith.constant 0 : index
    %c144 = arith.constant 144 : index
    %c0_98 = arith.constant 0 : index
    %96 = tpu.strided_load %arg5[%c0_97, %c144, %c0_98] {strides = array<i32: 1, 2, 1>} : memref<1x288x8xf32, #tpu.memory_space<vmem>>, vector<1x8x8xf32>
    %c0_99 = arith.constant 0 : index
    %c145 = arith.constant 145 : index
    %c0_100 = arith.constant 0 : index
    %97 = tpu.strided_load %arg5[%c0_99, %c145, %c0_100] {strides = array<i32: 1, 2, 1>} : memref<1x288x8xf32, #tpu.memory_space<vmem>>, vector<1x8x8xf32>
    %98 = arith.addf %96, %97 : vector<1x8x8xf32>
    %c0_101 = arith.constant 0 : index
    %c162 = arith.constant 162 : index
    %c0_102 = arith.constant 0 : index
    %99 = tpu.strided_load %arg5[%c0_101, %c162, %c0_102] {strides = array<i32: 1, 2, 1>} : memref<1x288x8xf32, #tpu.memory_space<vmem>>, vector<1x8x8xf32>
    %100 = arith.addf %98, %99 : vector<1x8x8xf32>
    %c0_103 = arith.constant 0 : index
    %c163 = arith.constant 163 : index
    %c0_104 = arith.constant 0 : index
    %101 = tpu.strided_load %arg5[%c0_103, %c163, %c0_104] {strides = array<i32: 1, 2, 1>} : memref<1x288x8xf32, #tpu.memory_space<vmem>>, vector<1x8x8xf32>
    %102 = arith.addf %100, %101 : vector<1x8x8xf32>
    %c0_105 = arith.constant 0 : index
    %c32 = arith.constant 32 : index
    %c0_106 = arith.constant 0 : index
    %103 = vector.load %arg4[%c0_105, %c32, %c0_106] : memref<1x64x8xf32, #tpu.memory_space<vmem>>, vector<1x8x8xf32>
    tpu.vector_store %arg4[%c0_105, %c32, %c0_106], %102 {strides = array<i32>} : memref<1x64x8xf32, #tpu.memory_space<vmem>>, vector<1x8x8xf32>,
    %c0_107 = arith.constant 0 : index
    %c180 = arith.constant 180 : index
    %c0_108 = arith.constant 0 : index
    %104 = tpu.strided_load %arg5[%c0_107, %c180, %c0_108] {strides = array<i32: 1, 2, 1>} : memref<1x288x8xf32, #tpu.memory_space<vmem>>, vector<1x8x8xf32>
    %c0_109 = arith.constant 0 : index
    %c181 = arith.constant 181 : index
    %c0_110 = arith.constant 0 : index
    %105 = tpu.strided_load %arg5[%c0_109, %c181, %c0_110] {strides = array<i32: 1, 2, 1>} : memref<1x288x8xf32, #tpu.memory_space<vmem>>, vector<1x8x8xf32>
    %106 = arith.addf %104, %105 : vector<1x8x8xf32>
    %c0_111 = arith.constant 0 : index
    %c198 = arith.constant 198 : index
    %c0_112 = arith.constant 0 : index
    %107 = tpu.strided_load %arg5[%c0_111, %c198, %c0_112] {strides = array<i32: 1, 2, 1>} : memref<1x288x8xf32, #tpu.memory_space<vmem>>, vector<1x8x8xf32>
    %108 = arith.addf %106, %107 : vector<1x8x8xf32>
    %c0_113 = arith.constant 0 : index
    %c199 = arith.constant 199 : index
    %c0_114 = arith.constant 0 : index
    %109 = tpu.strided_load %arg5[%c0_113, %c199, %c0_114] {strides = array<i32: 1, 2, 1>} : memref<1x288x8xf32, #tpu.memory_space<vmem>>, vector<1x8x8xf32>
    %110 = arith.addf %108, %109 : vector<1x8x8xf32>
    %c0_115 = arith.constant 0 : index
    %c40 = arith.constant 40 : index
    %c0_116 = arith.constant 0 : index
    %111 = vector.load %arg4[%c0_115, %c40, %c0_116] : memref<1x64x8xf32, #tpu.memory_space<vmem>>, vector<1x8x8xf32>
    tpu.vector_store %arg4[%c0_115, %c40, %c0_116], %110 {strides = array<i32>} : memref<1x64x8xf32, #tpu.memory_space<vmem>>, vector<1x8x8xf32>,
    %c0_117 = arith.constant 0 : index
    %c216 = arith.constant 216 : index
    %c0_118 = arith.constant 0 : index
    %112 = tpu.strided_load %arg5[%c0_117, %c216, %c0_118] {strides = array<i32: 1, 2, 1>} : memref<1x288x8xf32, #tpu.memory_space<vmem>>, vector<1x8x8xf32>
    %c0_119 = arith.constant 0 : index
    %c217 = arith.constant 217 : index
    %c0_120 = arith.constant 0 : index
    %113 = tpu.strided_load %arg5[%c0_119, %c217, %c0_120] {strides = array<i32: 1, 2, 1>} : memref<1x288x8xf32, #tpu.memory_space<vmem>>, vector<1x8x8xf32>
    %114 = arith.addf %112, %113 : vector<1x8x8xf32>
    %c0_121 = arith.constant 0 : index
    %c234 = arith.constant 234 : index
    %c0_122 = arith.constant 0 : index
    %115 = tpu.strided_load %arg5[%c0_121, %c234, %c0_122] {strides = array<i32: 1, 2, 1>} : memref<1x288x8xf32, #tpu.memory_space<vmem>>, vector<1x8x8xf32>
    %116 = arith.addf %114, %115 : vector<1x8x8xf32>
    %c0_123 = arith.constant 0 : index
    %c235 = arith.constant 235 : index
    %c0_124 = arith.constant 0 : index
    %117 = tpu.strided_load %arg5[%c0_123, %c235, %c0_124] {strides = array<i32: 1, 2, 1>} : memref<1x288x8xf32, #tpu.memory_space<vmem>>, vector<1x8x8xf32>
    %118 = arith.addf %116, %117 : vector<1x8x8xf32>
    %c0_125 = arith.constant 0 : index
    %c48 = arith.constant 48 : index
    %c0_126 = arith.constant 0 : index
    %119 = vector.load %arg4[%c0_125, %c48, %c0_126] : memref<1x64x8xf32, #tpu.memory_space<vmem>>, vector<1x8x8xf32>
    tpu.vector_store %arg4[%c0_125, %c48, %c0_126], %118 {strides = array<i32>} : memref<1x64x8xf32, #tpu.memory_space<vmem>>, vector<1x8x8xf32>,
    %c0_127 = arith.constant 0 : index
    %c252 = arith.constant 252 : index
    %c0_128 = arith.constant 0 : index
    %120 = tpu.strided_load %arg5[%c0_127, %c252, %c0_128] {strides = array<i32: 1, 2, 1>} : memref<1x288x8xf32, #tpu.memory_space<vmem>>, vector<1x8x8xf32>
    %c0_129 = arith.constant 0 : index
    %c253 = arith.constant 253 : index
    %c0_130 = arith.constant 0 : index
    %121 = tpu.strided_load %arg5[%c0_129, %c253, %c0_130] {strides = array<i32: 1, 2, 1>} : memref<1x288x8xf32, #tpu.memory_space<vmem>>, vector<1x8x8xf32>
    %122 = arith.addf %120, %121 : vector<1x8x8xf32>
    %c0_131 = arith.constant 0 : index
    %c270 = arith.constant 270 : index
    %c0_132 = arith.constant 0 : index
    %123 = tpu.strided_load %arg5[%c0_131, %c270, %c0_132] {strides = array<i32: 1, 2, 1>} : memref<1x288x8xf32, #tpu.memory_space<vmem>>, vector<1x8x8xf32>
    %124 = arith.addf %122, %123 : vector<1x8x8xf32>
    %c0_133 = arith.constant 0 : index
    %c271 = arith.constant 271 : index
    %c0_134 = arith.constant 0 : index
    %125 = tpu.strided_load %arg5[%c0_133, %c271, %c0_134] {strides = array<i32: 1, 2, 1>} : memref<1x288x8xf32, #tpu.memory_space<vmem>>, vector<1x8x8xf32>
    %126 = arith.addf %124, %125 : vector<1x8x8xf32>
    %c0_135 = arith.constant 0 : index
    %c56 = arith.constant 56 : index
    %c0_136 = arith.constant 0 : index
    %127 = vector.load %arg4[%c0_135, %c56, %c0_136] : memref<1x64x8xf32, #tpu.memory_space<vmem>>, vector<1x8x8xf32>
    tpu.vector_store %arg4[%c0_135, %c56, %c0_136], %126 {strides = array<i32>} : memref<1x64x8xf32, #tpu.memory_space<vmem>>, vector<1x8x8xf32>,
    return
  }
  func.func @transform_0(%arg0: i32) -> (i32, i32, i32) {
    %c0_i32 = arith.constant 0 : i32
    %c0_i32_0 = arith.constant 0 : i32
    %c0_i32_1 = arith.constant 0 : i32
    return %arg0, %c0_i32, %c0_i32_0 : i32, i32, i32
  }
  func.func @transform_1(%arg0: i32) -> (i32, i32) {
    %c0_i32 = arith.constant 0 : i32
    %c0_i32_0 = arith.constant 0 : i32
    %c0_i32_1 = arith.constant 0 : i32
    return %c0_i32, %c0_i32_0 : i32, i32
  }
  func.func @transform_2(%arg0: i32) -> (i32, i32) {
    %c0_i32 = arith.constant 0 : i32
    %c0_i32_0 = arith.constant 0 : i32
    %c0_i32_1 = arith.constant 0 : i32
    return %c0_i32, %c0_i32_0 : i32, i32
  }
  func.func @transform_3(%arg0: i32) -> (i32, i32, i32) {
    %c0_i32 = arith.constant 0 : i32
    %c0_i32_0 = arith.constant 0 : i32
    %c0_i32_1 = arith.constant 0 : i32
    return %arg0, %c0_i32, %c0_i32_0 : i32, i32, i32
  }
}

</mosaic_0001>

<bundles_post_ra>
// kernel: tpu_custom_call.1
= control target key start
LH: loop header
LB: loop body
LE: loop exit
PB: predicated region body
PF: predicated region fallthrough
CT: control target
= control target key end

     0   :  { %s2483_s12 = smov 0   ;;  %s3925_s0 = inlined_call_operand.vmem [shape: bf16[2,342,4], index: 0, kind: input, shape index: {}]   ;;  %s3926_s1 = inlined_call_operand.vmem [shape: bf16[36,8], index: 1, kind: input, shape index: {}]   ;;  %s3927_s2 = inlined_call_operand.vmem [shape: f32[2,8], index: 2, kind: input, shape index: {}]   ;;  %s3928_s3 = inlined_call_operand.vmem [shape: f32[2,64,8], index: 3, kind: output, shape index: {}]  }
   0x1 LB: > { %s2261_s13 = sadd.s32 4294967295, %s2453_s12   ;;  %p2265_p0 = scmp.ge.s32.totalorder %s2453_s12, 1  ;;  %s2453_s12 = sphi %s2483_s12, %s13_s12  }
   0x2   : > { %p137_p1 = scmp.lt.s32.totalorder %s2453_s12, 3 }
   0x4   : > { %p138_p2 = pnand %p2265_p0, %p137_p1 }
   0x6   : > { %141 = sbr.rel (%p138_p2) target bundleno = 750 (0x2ee), region = 32 }
   0xd   : > { %p161_p3 = scmp.lt.s32.totalorder %s2261_s13, 1  ;;  %vm503_vm0 = vcmask 1046528   ;;  %vm763_vm1 = vcmask 1045504   ;;  %vm315_vm2 = vsmask.f32 7424  ;;  %s2455_s18 = smov 12  }
   0xe   : > { %s2456_s19 = smov 8   ;;  %s2457_s20 = smov 20   ;;  %vm633_vm3 = vsmask.f32 6400  ;;  %v2427_v59 = vld [vmem:[%s3926_s1] sm:$0xff]   ;;  %vm1023_vm5 = vcmask 1044480  }
   0xf   : > { %s3939_s13 = smov (!%p161_p3, %s2261_s13), 1  ;;  %s2458_s21 = smov 4   ;;  %2344 = vmatprep.subr.bf16.mxu0 %v2427_v59  ;;  %2386 = vmatprep.subr.bf16.mxu1 %v2427_v59  ;;  %vm893_vm4 = vsmask.f32 5376  ;;  %vm1450_vm6 = vcmask 1041408   ;;  %vm1097_vm7 = vcmask 31744  }
  0x10   : > { %s2394_s14 = smul.u32 172, %s3939_s13  ;;  %2345 = vmatpush3.bf16.msra.mxu0 %v2427_v59  ;;  %2389 = vmatpush3.bf16.msra.mxu1 %v2427_v59  ;;  %s2459_s26 = smov 16   ;;  %vm1134_vm8 = vcmask 64512   ;;  %vm1171_vm9 = vcmask 97280   ;;  %vm1208_vm10 = vcmask 130048   ;;  %vm1245_vm11 = vcmask 162816  }
  0x11   : > { %s2460_s27 = smov 24   ;;  %s2461_s28 = smov 28   ;;  %vm1282_vm12 = vcmask 195584   ;;  %vm1319_vm13 = vcmask 228352   ;;  %vm1356_vm14 = vcmask 261120   ;;  %vm1413_vm15 = vcmask 293888  }
  0x12   : > { %s2497_s17 = scalar_lea.vmem %s3925_s0, %s2394_s14  ;;  %s2462_s29 = smov 32  }
  0x13   : > { %v175_v0 = vld [vmem:[%s2497_s17 + $0xc] sm:$0xf]  ;;  %v176_v1 = vld [vmem:[%s2497_s17 + $0x10] sm:$0xf]  ;;  %v2502_v2 = vld [vmem:[%s2497_s17 + $0x14] sm:$0xf] }
  0x14   : > { %v210_v3 = vld [vmem:[%s2497_s17 + $0x8] sm:$0xe]  ;;  %v2506_v4 = vcombine.low %v176_v1, %v2502_v2  ;;  %v173_v5 = vld [vmem:[%s2497_s17 + $0x4] sm:$0xf]  ;;  %v209_v8 = vld [vmem:[%s2497_s17] sm:$0xe] }
  0x15   : > { %v174_v6 = vld [vmem:[%s2497_s17 + $0x8] sm:$0xf]  ;;  %v2289_v7 = vcombine.low %v210_v3, %v175_v0  ;;  %v172_v10 = vld [vmem:[%s2497_s17] sm:$0xf]  ;;  %v2288_v13 = vcombine.low %v209_v8, %v173_v5  ;;  %v2519_v16 = vld [vmem:[%s2497_s17 + $0x18] sm:$0xff]   ;;  %s2322_s7 = sshll.u32 %s3939_s13, 6 }
  0x16   : > { %v2511_v9 = vcombine.low %v174_v6, %v175_v0  ;;  %v215_v11 = vld [vmem:[%s2497_s17 + $0x8] sm:$0xc]  ;;  %v507_v12 = vrot.slane %v2506_v4, 1  ;;  %v2516_v14 = vcombine.low %v172_v10, %v173_v5  ;;  %v765_v19 = vrot.slane %v2506_v4, 2  ;;  %v216_v34 = vld [vmem:[%s2497_s17 + $0x10] sm:$0xc]  ;;  %s3904_s10 = scalar_lea.vmem %s3928_s3, %s2322_s7 }
  0x17   : > { %v2293_v15 = vcombine.low %v215_v11, %v175_v0  ;;  %v588_v17 = vrot.slane %v2289_v7, 1  ;;  %v504_v21 = vrot.slane %v2288_v13, 1  ;;  %v509_v28 = vrot.slane %v2519_v16, 1  ;;  %v2550_v45 = vld [vmem:[%s2497_s17 + $0x20] sm:$0xff]   ;;  %v2429_v1 = vld [vmem:[%s3926_s1 + $0x8] sm:$0xff]  }
  0x18   : > { %v505_v18 = vrot.slane %v2511_v9, 1  ;;  %v324_v20 = vshll.u32 %v2511_v9, 16  ;;  %v317_v24 = vshrl.u32 %v2516_v14, 16  ;;  %v319_v25 = vshll.u32 %v2516_v14, 16  ;;  %v221_v6 = vld [vmem:[%s2497_s17 + $0x10] sm:$0x8]  ;;  %2346 = vmatprep.subr.bf16.mxu0 %v2429_v1  ;;  %2387 = vmatprep.subr.bf16.mxu1 %v2429_v1 }
  0x19   : > { %v764_v22 = vrot.slane %v2293_v15, 2  ;;  %v589_v23 = vsel %vm503_vm0, %v588_v17, %v507_v12  ;;  %v328_v31 = vshrl.u32 %v2511_v9, 16  ;;  %v332_v32 = vshll.u32 %v2506_v4, 16  ;;  %2347 = vmatpush3.bf16.msra.mxu0 %v2429_v1  ;;  %2390 = vmatpush3.bf16.msra.mxu1 %v2429_v1 }
  0x1a   : > { %594 = vrot.lane.b32.xlu0 %v589_v23, %s2455_s18  ;;  %v506_v26 = vsel %vm503_vm0, %v504_v21, %v505_v18  ;;  %v326_v29 = vrot.slane %v324_v20, 1  ;;  %v321_v30 = vrot.slane %v319_v25, 1  ;;  %v336_v33 = vshrl.u32 %v2506_v4, 16 }
  0x1b   : > { %v766_v27 = vsel %vm763_vm1, %v764_v22, %v765_v19  ;;  %541 = vrot.lane.b32.xlu1 %v506_v26, %s2456_s19  ;;  %v508_v35 = vsel %vm503_vm0, %v505_v18, %v507_v12  ;;  %v2538_v36 = vshll.u32 %v2519_v16, 16  ;;  %v2541_v37 = vshrl.u32 %v2519_v16, 16 }
  0x1c   : > { %v635_v38 = vshrl.u32 %v2289_v7, 16  ;;  %v322_v39 = vor.u32 %v321_v30, %v317_v24  ;;  %v767_v40 = vrot.slane %v2519_v16, 2  ;;  %v330_v41 = vor.u32 %v328_v31, %v326_v29 }
  0x1d   : > { %v2545_v42 = vrot.slane %v332_v32, 1  ;;  %v642_v43 = vrot.slane %v336_v33, 1  ;;  %v643_v44 = vrot.slane %v332_v32, 2  ;;  %v638_v48 = vshll.u32 %v2289_v7, 16 }
  0x1e   : > { %801 = vrot.lane.b32.xlu0 %v766_v27, %s2457_s20  ;;  %v327_v46 = vsel %vm315_vm2, %v322_v39, %v326_v29  ;;  %v637_v47 = vrot.slane %v635_v38, 1  ;;  %v2557_v49 = vsel %vm503_vm0, %v507_v12, %v509_v28  ;;  %v646_v50 = vrot.slane %v2541_v37, 1 }
  0x1f   : > { %543 = vrot.lane.b32.xlu1 %v508_v35, %s2456_s19  ;;  %v647_v51 = vrot.slane %v2538_v36, 2  ;;  %v2294_v52 = vcombine.low %v216_v34, %v2502_v2  ;;  %v640_v53 = vrot.slane %v638_v48, 2  ;;  %v335_v54 = vsel %vm315_vm2, %v330_v41, %v2545_v42  ;;  %v2620_v35 = vld [vmem:[%s2497_s17 + $0x28] sm:$0xff]  }
  0x20   : > { %v644_v55 = vor.u32 %v643_v44, %v642_v43  ;;  %v768_v60 = vsel %vm763_vm1, %v765_v19, %v767_v40  ;;  %v2574_v62 = vshll.u32 %v2550_v45, 16  ;;  %v2577_v63 = vshrl.u32 %v2550_v45, 16 }
  0x21   : > { %v641_v56 = vor.u32 %v640_v53, %v637_v47  ;;  %v895_v57 = vshrl.u32 %v2294_v52, 16  ;;  %v898_v58 = vshll.u32 %v2294_v52, 16  ;;  %v2571_v61 = vor.u32 %v647_v51, %v646_v50  ;;  %v2648_v51 = vld [vmem:[%s2497_s17 + $0x30] sm:$0xff]  }
  0x22   : > { %464 = vrot.lane.b32.xlu0 %v327_v46, %s2458_s21  ;;  %v902_v0 = vrot.slane %v2541_v37, 2  ;;  %v848_v3 = vrot.slane %v2294_v52, 2  ;;  %v903_v5 = vrot.slane %v2538_v36, 3  ;;  %v769_v12 = vrot.slane %v2550_v45, 2 }
  0x23   : > { %596 = vrot.lane.b32.xlu1 %v2557_v49, %s2455_s18  ;;  %v645_v7 = vsel %vm633_vm3, %v641_v56, %v644_v55  ;;  %v897_v8 = vrot.slane %v895_v57, 2  ;;  %v900_v10 = vrot.slane %v898_v58, 3  ;;  %v649_v11 = vsel %vm633_vm3, %v644_v55, %v2571_v61  ;;  %v2430_v55 = vld [vmem:[%s3926_s1 + $0x10] ss:$0 sps:$4 sm:$0x33]  }
  0x24   : > { %v906_v13 = vrot.slane %v2577_v63, 2  ;;  %v907_v15 = vrot.slane %v2574_v62, 3  ;;  %v849_v17 = vsel %vm763_vm1, %v848_v3, %v767_v40  ;;  %v904_v18 = vor.u32 %v903_v5, %v902_v0  ;;  %2392 = vmatprep.subr.msk.bf16.mxu0 %vm1450_vm6, %v2430_v55  ;;  %2393 = vmatprep.subr.msk.bf16.mxu1 %vm1450_vm6, %v2430_v55 }
  0x25   : > { %v901_v19 = vor.u32 %v900_v10, %v897_v8  ;;  %v2298_v20 = vcombine.low %v221_v6, %v2502_v2  ;;  %v770_v21 = vsel %vm763_vm1, %v767_v40, %v769_v12  ;;  %v1025_v25 = vrot.slane %v2519_v16, 3 }
  0x26   : > { %466 = vrot.lane.b32.xlu0 %v335_v54, %s2458_s21  ;;  %v2600_v22 = vor.u32 %v907_v15, %v906_v13  ;;  %v338_v26 = vor.u32 %v336_v33, %v2545_v42  ;;  %v342_v27 = vrot.slane %v2538_v36, 1  ;;  %v1027_v30 = vrot.slane %v2550_v45, 3 }
  0x27   : > { %803 = vrot.lane.b32.xlu1 %v768_v60, %s2457_s20  ;;  %v905_v23 = vsel %vm893_vm4, %v901_v19, %v904_v18  ;;  %v1024_v24 = vrot.slane %v2298_v20, 3  ;;  %v350_v34 = vrot.slane %v2574_v62, 1  ;;  %v511_v38 = vrot.slane %v2550_v45, 1 }
  0x28   : > { %v909_v2 = vsel %vm893_vm4, %v904_v18, %v2600_v22  ;;  %v343_v31 = vsel %vm315_vm2, %v338_v26, %v342_v27  ;;  %v346_v32 = vor.u32 %v2541_v37, %v342_v27  ;;  %v1028_v33 = vsel %vm1023_vm5, %v1025_v25, %v1027_v30  ;;  %v2693_v18 = vld [vmem:[%s2497_s17 + $0x38] sm:$0xff]  }
  0x29   : > { %v1026_v29 = vsel %vm1023_vm5, %v1024_v24, %v1025_v25  ;;  %v356_v37 = vshll.u32 %v2620_v35, 16  ;;  %v360_v39 = vshrl.u32 %v2620_v35, 16  ;;  %v650_v40 = vrot.slane %v2577_v63, 1 }
  0x2a   : > { %724 = vrot.lane.b32.xlu0 %v645_v7, %s2459_s26  ;;  %v351_v36 = vsel %vm315_vm2, %v346_v32, %v350_v34  ;;  %v651_v41 = vrot.slane %v2574_v62, 2  ;;  %v512_v42 = vsel %vm503_vm0, %v509_v28, %v511_v38  ;;  %v513_v43 = vrot.slane %v2620_v35, 1  ;;  %v2714_v32 = vld [vmem:[%s2497_s17 + $0x40] sm:$0xff]  }
  0x2b   : > { %726 = vrot.lane.b32.xlu1 %v649_v11, %s2459_s26  ;;  %v654_v44 = vrot.slane %v360_v39, 1  ;;  %v655_v46 = vrot.slane %v356_v37, 2  ;;  %v771_v52 = vrot.slane %v2620_v35, 2  ;;  %v2658_v53 = vshll.u32 %v2648_v51, 16 }
  0x2c   : > { %v652_v47 = vor.u32 %v651_v41, %v650_v40  ;;  %v514_v48 = vsel %vm503_vm0, %v511_v38, %v513_v43  ;;  %v2661_v54 = vshrl.u32 %v2648_v51, 16  ;;  %v910_v56 = vrot.slane %v360_v39, 2 }
  0x2d   : > { %v2645_v50 = vor.u32 %v655_v46, %v654_v44  ;;  %v911_v57 = vrot.slane %v356_v37, 3  ;;  %v772_v58 = vsel %vm763_vm1, %v769_v12, %v771_v52  ;;  %v773_v59 = vrot.slane %v2648_v51, 2 }
  0x2e   : > { %854 = vrot.lane.b32.xlu0 %v849_v17, %s2460_s27  ;;  %v653_v28 = vsel %vm633_vm3, %v2571_v61, %v652_v47  ;;  %v914_v60 = vrot.slane %v2661_v54, 2  ;;  %v915_v61 = vrot.slane %v2658_v53, 3  ;;  %v1452_v0 = vsel %vm1450_vm6, %v2430_v55, 0 }
  0x2f   : > { %856 = vrot.lane.b32.xlu1 %v770_v21, %s2460_s27  ;;  %v912_v62 = vor.u32 %v911_v57, %v910_v56  ;;  %v774_v1 = vsel %vm763_vm1, %v771_v52, %v773_v59  ;;  %2349 = vmatpush3.bf16.msra.mxu0 %v1452_v0  ;;  %v1029_v6 = vrot.slane %v2620_v35, 3  ;;  %v354_v8 = vor.u32 %v2577_v63, %v350_v34 }
  0x30   : > { %v916_v3 = vor.u32 %v915_v61, %v914_v60  ;;  %2391 = vmatpush3.bf16.msra.mxu1 %v1452_v0  ;;  %v358_v10 = vrot.slane %v356_v37, 1  ;;  %v1031_v12 = vrot.slane %v2648_v51, 3  ;;  %v366_v17 = vrot.slane %v2658_v53, 1  ;;  %v2750_v60 = vld [vmem:[%s2497_s17 + $0x48] sm:$0xff]  }
  0x31   : > { %v913_v5 = vsel %vm893_vm4, %v2600_v22, %v912_v62  ;;  %v1030_v11 = vsel %vm1023_vm5, %v1027_v30, %v1029_v6  ;;  %v515_v20 = vrot.slane %v2648_v51, 1  ;;  %v376_v22 = vshrl.u32 %v2693_v18, 16 }
  0x32   : > { %984 = vrot.lane.b32.xlu0 %v905_v23, %s2461_s28  ;;  %v917_v7 = vsel %vm893_vm4, %v912_v62, %v916_v3  ;;  %v359_v13 = vsel %vm315_vm2, %v354_v8, %v358_v10  ;;  %v362_v15 = vor.u32 %v360_v39, %v358_v10  ;;  %v1032_v63 = vsel %vm1023_vm5, %v1029_v6, %v1031_v12 }
  0x33   : > { %986 = vrot.lane.b32.xlu1 %v909_v2, %s2461_s28  ;;  %v658_v23 = vrot.slane %v2661_v54, 1  ;;  %v659_v24 = vrot.slane %v2658_v53, 2  ;;  %v516_v25 = vsel %vm503_vm0, %v513_v43, %v515_v20  ;;  %v517_v2 = vrot.slane %v2693_v18, 1 }
  0x34   : > { %v367_v19 = vsel %vm315_vm2, %v362_v15, %v366_v17  ;;  %v662_v26 = vrot.slane %v376_v22, 1  ;;  %v2723_v38 = vshll.u32 %v2714_v32, 16  ;;  %v2726_v37 = vshrl.u32 %v2714_v32, 16  ;;  %v2775_v15 = vld [vmem:[%s2497_s17 + $0x50] sm:$0xff]  }
  0x35   : > { %v518_v30 = vsel %vm503_vm0, %v515_v20, %v517_v2  ;;  %v918_v39 = vrot.slane %v376_v22, 2  ;;  %v370_v52 = vor.u32 %v2661_v54, %v366_v17  ;;  %v1035_v56 = vrot.slane %v2714_v32, 3 }
  0x36   : > { %1061 = vrot.lane.b32.xlu0 %v1026_v29, %s2462_s29  ;;  %v660_v29 = vor.u32 %v659_v24, %v658_v23  ;;  %v922_v43 = vrot.slane %v2726_v37, 2  ;;  %v923_v44 = vrot.slane %v2723_v38, 3  ;;  %v519_v62 = vrot.slane %v2714_v32, 1 }
  0x37   : > { %468 = vrot.lane.b32.xlu1 %v343_v31, %s2458_s21  ;;  %v388_v0 = vshll.u32 %v2750_v60, 16  ;;  %v2785_v20 = vshll.u32 %v2775_v15, 16 }
  0x38   : > { %v661_v34 = vsel %vm633_vm3, %v2645_v50, %v660_v29  ;;  %v520_v6 = vsel %vm503_vm0, %v517_v2, %v519_v62 }
  0x39   : > { %v671_v10 = vrot.slane %v388_v0, 2  ;;  %v927_v23 = vrot.slane %v388_v0, 3 }
  0x3a   : > { %1063 = vrot.lane.b32.xlu0 %v1028_v33, %s2462_s29 }
  0x3b   : > { %470 = vrot.lane.b32.xlu1 %v351_v36, %s2458_s21  ;;  %v775_v36 = vrot.slane %v2693_v18, 2 }
  0x3d   : > { %v776_v41 = vsel %vm763_vm1, %v773_v59, %v775_v36  ;;  %v382_v59 = vrot.slane %v2723_v38, 1 }
  0x3e   : > { %545 = vrot.lane.b32.xlu0 %v2557_v49, %s2456_s19  ;;  %v657_v49 = vsel %vm633_vm3, %v652_v47, %v2645_v50 }
  0x3f   : > { %547 = vrot.lane.b32.xlu1 %v512_v42, %s2456_s19 }
  0x42   : > { %598 = vrot.lane.b32.xlu0 %v512_v42, %s2455_s18  ;;  %v777_v42 = vrot.slane %v2714_v32, 2 }
  0x43   : > { %600 = vrot.lane.b32.xlu1 %v514_v48, %s2455_s18 }
  0x44   : > { %v778_v47 = vsel %vm763_vm1, %v775_v36, %v777_v42  ;;  %v1037_v36 = vrot.slane %v2750_v60, 3 }
  0x46   : > { %728 = vrot.lane.b32.xlu0 %v653_v28, %s2459_s26  ;;  %v1033_v28 = vrot.slane %v2693_v18, 3 }
  0x47   : > { %730 = vrot.lane.b32.xlu1 %v657_v49, %s2459_s26 }
  0x48   : > { %v1034_v55 = vsel %vm1023_vm5, %v1031_v12, %v1033_v28  ;;  %v1036_v54 = vsel %vm1023_vm5, %v1033_v28, %v1035_v56  ;;  %v2822_v28 = vld [vmem:[%s2497_s17 + $0x58] sm:$0xff]  }
  0x4a   : > { %805 = vrot.lane.b32.xlu0 %v770_v21, %s2457_s20  ;;  %v372_v21 = vshll.u32 %v2693_v18, 16 }
  0x4b   : > { %807 = vrot.lane.b32.xlu1 %v772_v58, %s2457_s20 }
  0x4c   : > { %v663_v27 = vrot.slane %v372_v21, 2  ;;  %v919_v40 = vrot.slane %v372_v21, 3  ;;  %v374_v53 = vrot.slane %v372_v21, 1  ;;  %v2788_v21 = vshrl.u32 %v2775_v15, 16 }
  0x4e   : > { %858 = vrot.lane.b32.xlu0 %v772_v58, %s2460_s27  ;;  %v664_v31 = vor.u32 %v663_v27, %v662_v26  ;;  %v920_v46 = vor.u32 %v919_v40, %v918_v39  ;;  %v375_v57 = vsel %vm315_vm2, %v370_v52, %v374_v53  ;;  %v378_v58 = vor.u32 %v376_v22, %v374_v53 }
  0x4f   : > { %860 = vrot.lane.b32.xlu1 %v774_v1, %s2460_s27  ;;  %v930_v2 = vrot.slane %v2788_v21, 2  ;;  %v931_v26 = vrot.slane %v2785_v20, 3  ;;  %v386_v40 = vor.u32 %v2726_v37, %v382_v59 }
  0x50   : > { %v665_v33 = vsel %vm633_vm3, %v660_v29, %v664_v31  ;;  %v921_v50 = vsel %vm893_vm4, %v916_v3, %v920_v46  ;;  %v383_v61 = vsel %vm315_vm2, %v378_v58, %v382_v59  ;;  %v666_v3 = vrot.slane %v2726_v37, 1 }
  0x51   : > { %v525_v59 = vrot.slane %v2822_v28, 1 }
  0x52   : > { %988 = vrot.lane.b32.xlu0 %v913_v5, %s2461_s28  ;;  %v667_v5 = vrot.slane %v2723_v38, 2 }
  0x53   : > { %990 = vrot.lane.b32.xlu1 %v917_v7, %s2461_s28  ;;  %v521_v7 = vrot.slane %v2750_v60, 1 }
  0x55   : > { %v2770_v12 = vsel %vm503_vm0, %v519_v62, %v521_v7 }
  0x56   : > { %1065 = vrot.lane.b32.xlu0 %v1030_v11, %s2462_s29  ;;  %v668_v11 = vor.u32 %v667_v5, %v666_v3 }
  0x57   : > { %472 = vrot.lane.b32.xlu1 %v359_v13, %s2458_s21 }
  0x58   : > { %v669_v17 = vsel %vm633_vm3, %v664_v31, %v668_v11  ;;  %v2803_v31 = vor.u32 %v931_v26, %v930_v2 }
  0x5a   : > { %1067 = vrot.lane.b32.xlu0 %v1032_v63, %s2462_s29 }
  0x5b   : > { %474 = vrot.lane.b32.xlu1 %v367_v19, %s2458_s21  ;;  %v779_v19 = vrot.slane %v2750_v60, 2 }
  0x5d   : > { %v780_v24 = vsel %vm763_vm1, %v777_v42, %v779_v19 }
  0x5e   : > { %549 = vrot.lane.b32.xlu0 %v514_v48, %s2456_s19  ;;  %v924_v48 = vor.u32 %v923_v44, %v922_v43  ;;  %v1038_v43 = vsel %vm1023_vm5, %v1035_v56, %v1037_v36  ;;  %v1039_v44 = vrot.slane %v2775_v15, 3  ;;  %v2834_v56 = vshll.u32 %v2822_v28, 16 }
  0x5f   : > { %551 = vrot.lane.b32.xlu1 %v516_v25, %s2456_s19 }
  0x60   : > { %v925_v49 = vsel %vm893_vm4, %v920_v46, %v924_v48  ;;  %v1040_v37 = vsel %vm1023_vm5, %v1037_v36, %v1039_v44  ;;  %v679_v5 = vrot.slane %v2834_v56, 2 }
  0x62   : > { %602 = vrot.lane.b32.xlu0 %v516_v25, %s2455_s18  ;;  %v781_v25 = vrot.slane %v2775_v15, 2 }
  0x63   : > { %604 = vrot.lane.b32.xlu1 %v518_v30, %s2455_s18 }
  0x66   : > { %732 = vrot.lane.b32.xlu0 %v661_v34, %s2459_s26 }
  0x67   : > { %734 = vrot.lane.b32.xlu1 %v665_v33, %s2459_s26 }
  0x6a   : > { %809 = vrot.lane.b32.xlu0 %v774_v1, %s2457_s20  ;;  %v392_v1 = vshrl.u32 %v2750_v60, 16 }
  0x6b   : > { %811 = vrot.lane.b32.xlu1 %v776_v41, %s2457_s20 }
  0x6c   : > { %v670_v8 = vrot.slane %v392_v1, 1  ;;  %v926_v22 = vrot.slane %v392_v1, 2 }
  0x6e   : > { %862 = vrot.lane.b32.xlu0 %v776_v41, %s2460_s27  ;;  %v2772_v13 = vor.u32 %v671_v10, %v670_v8  ;;  %v928_v27 = vor.u32 %v927_v23, %v926_v22  ;;  %v390_v41 = vrot.slane %v388_v0, 1  ;;  %v783_v22 = vrot.slane %v2822_v28, 2 }
  0x6f   : > { %864 = vrot.lane.b32.xlu1 %v778_v47, %s2460_s27 }
  0x70   : > { %v673_v63 = vsel %vm633_vm3, %v668_v11, %v2772_v13  ;;  %v929_v33 = vsel %vm893_vm4, %v924_v48, %v928_v27  ;;  %v933_v39 = vsel %vm893_vm4, %v928_v27, %v2803_v31  ;;  %v394_v48 = vor.u32 %v392_v1, %v390_v41 }
  0x72   : > { %992 = vrot.lane.b32.xlu0 %v921_v50, %s2461_s28  ;;  %v398_v50 = vrot.slane %v2785_v20, 1 }
  0x73   : > { %994 = vrot.lane.b32.xlu1 %v925_v49, %s2461_s28 }
  0x74   : > { %v399_v53 = vsel %vm315_vm2, %v394_v48, %v398_v50 }
  0x76   : > { %1069 = vrot.lane.b32.xlu0 %v1034_v55, %s2462_s29  ;;  %v523_v55 = vrot.slane %v2775_v15, 1 }
  0x77   : > { %476 = vrot.lane.b32.xlu1 %v375_v57, %s2458_s21  ;;  %v2837_v57 = vshrl.u32 %v2822_v28, 16 }
  0x78   : > { %v524_v1 = vsel %vm503_vm0, %v521_v7, %v523_v55  ;;  %v2860_v7 = vsel %vm503_vm0, %v523_v55, %v525_v59 }
  0x79   : > { %v678_v3 = vrot.slane %v2837_v57, 1 }
  0x7a   : > { %1071 = vrot.lane.b32.xlu0 %v1036_v54, %s2462_s29  ;;  %v674_v54 = vrot.slane %v2788_v21, 1 }
  0x7b   : > { %478 = vrot.lane.b32.xlu1 %v383_v61, %s2458_s21  ;;  %v675_v61 = vrot.slane %v2785_v20, 2 }
  0x7e   : > { %553 = vrot.lane.b32.xlu0 %v518_v30, %s2456_s19  ;;  %v2801_v30 = vsel %vm763_vm1, %v779_v19, %v781_v25 }
  0x7f   : > { %555 = vrot.lane.b32.xlu1 %v520_v6, %s2456_s19 }
  0x82   : > { %606 = vrot.lane.b32.xlu0 %v520_v6, %s2455_s18 }
  0x83   : > { %608 = vrot.lane.b32.xlu1 %v2770_v12, %s2455_s18 }
  0x86   : > { %736 = vrot.lane.b32.xlu0 %v669_v17, %s2459_s26  ;;  %v2862_v17 = vor.u32 %v679_v5, %v678_v3 }
  0x87   : > { %738 = vrot.lane.b32.xlu1 %v673_v63, %s2459_s26  ;;  %v2865_v63 = vld [vmem:[%s2497_s17 + $0x60] sm:$0xff]  }
  0x8a   : > { %813 = vrot.lane.b32.xlu0 %v778_v47, %s2457_s20  ;;  %v391_v47 = vsel %vm315_vm2, %v386_v40, %v390_v41  ;;  %v934_v41 = vrot.slane %v2837_v57, 2 }
  0x8b   : > { %815 = vrot.lane.b32.xlu1 %v780_v24, %s2457_s20 }
  0x8c   : > { %v595_v29 = vpop.permute.xlu0 %594 }
  0x8d   : > { %v542_v34 = vpop.permute.xlu1 %541 }
  0x8e   : > { %866 = vrot.lane.b32.xlu0 %v780_v24, %s2460_s27 }
  0x8f   : > { %868 = vrot.lane.b32.xlu1 %v2801_v30, %s2460_s27 }
  0x90   : > { %v2810_v38 = vpop.permute.xlu0 %801 }
  0x91   : > { %v544_v42 = vpop.permute.xlu1 %543 }
  0x92   : > { %996 = vrot.lane.b32.xlu0 %v929_v33, %s2461_s28 }
  0x93   : > { %998 = vrot.lane.b32.xlu1 %v933_v39, %s2461_s28 }
  0x94   : > { %v465_v46 = vpop.permute.xlu0 %464 }
  0x95   : > { %v597_v49 = vpop.permute.xlu1 %596  ;;  %v1099_v62 = vsel %vm1097_vm7, %v2516_v14, %v465_v46  ;;  %v676_v14 = vor.u32 %v675_v61, %v674_v54  ;;  %v785_v46 = vrot.slane %v2865_v63, 2 }
  0x96   : > { %1073 = vrot.lane.b32.xlu0 %v1038_v43, %s2462_s29  ;;  %v1136_v10 = vsel %vm1134_vm8, %v1099_v62, %v542_v34  ;;  %v2883_v34 = vshrl.u32 %v2865_v63, 16 }
  0x97   : > { %480 = vrot.lane.b32.xlu1 %v391_v47, %s2458_s21  ;;  %v1173_v19 = vsel %vm1171_vm9, %v1136_v10, %v595_v29  ;;  %v677_v24 = vsel %vm633_vm3, %v2772_v13, %v676_v14  ;;  %v681_v27 = vsel %vm633_vm3, %v676_v14, %v2862_v17  ;;  %v2880_v29 = vshll.u32 %v2865_v63, 16 }
  0x98   : > { %v467_v52 = vpop.permute.xlu0 %466  ;;  %v784_v13 = vsel %vm763_vm1, %v781_v25, %v783_v22  ;;  %v938_v47 = vrot.slane %v2883_v34, 2  ;;  %v2911_v61 = vsel %vm763_vm1, %v783_v22, %v785_v46  ;;  %v1043_v14 = vrot.slane %v2865_v63, 3 }
  0x99   : > { %v804_v58 = vpop.permute.xlu1 %803  ;;  %v1101_v8 = vsel %vm1097_vm7, %v2511_v9, %v467_v52  ;;  %v939_v25 = vrot.slane %v2880_v29, 3 }
  0x9a   : > { %1075 = vrot.lane.b32.xlu0 %v1040_v37, %s2462_s29  ;;  %v1138_v9 = vsel %vm1134_vm8, %v1101_v8, %v544_v42  ;;  %v935_v42 = vrot.slane %v2834_v56, 3  ;;  %v406_v8 = vrot.slane %v2834_v56, 1 }
  0x9b   : > { %482 = vrot.lane.b32.xlu1 %v399_v53, %s2458_s21  ;;  %v1175_v2 = vsel %vm1171_vm9, %v1138_v9, %v597_v49  ;;  %v2913_v62 = vor.u32 %v939_v25, %v938_v47 }
  0x9c   : > { %v725_v0 = vpop.permute.xlu0 %724  ;;  %v936_v53 = vor.u32 %v935_v42, %v934_v41  ;;  %v410_v20 = vor.u32 %v2837_v57, %v406_v8  ;;  %v527_v57 = vrot.slane %v2865_v63, 1 }
  0x9d   : > { %v727_v6 = vpop.permute.xlu1 %726  ;;  %v1210_v23 = vsel %vm1208_vm10, %v1173_v19, %v725_v0 }
  0x9e   : > { %557 = vrot.lane.b32.xlu0 %v2770_v12, %s2456_s19  ;;  %v1247_v36 = vsel %vm1245_vm11, %v1210_v23, %v2810_v38  ;;  %v1212_v39 = vsel %vm1208_vm10, %v1175_v2, %v727_v6  ;;  %v937_v0 = vsel %vm893_vm4, %v2803_v31, %v936_v53  ;;  %v941_v5 = vsel %vm893_vm4, %v936_v53, %v2913_v62 }
  0x9f   : > { %559 = vrot.lane.b32.xlu1 %v524_v1, %s2456_s19  ;;  %v1249_v37 = vsel %vm1245_vm11, %v1212_v39, %v804_v58  ;;  %v402_v6 = vor.u32 %v2788_v21, %v398_v50  ;;  %v414_v21 = vrot.slane %v2880_v29, 1  ;;  %v2941_v50 = vld [vmem:[%s2497_s17 + $0x68] sm:$0xff]   ;;  %v683_v2 = vrot.slane %v2880_v29, 2 }
  0xa0   : > { %v855_v11 = vpop.permute.xlu0 %854  ;;  %v2953_v19 = vshll.u32 %v2941_v50, 16  ;;  %v2956_v22 = vshrl.u32 %v2941_v50, 16 }
  0xa1   : > { %v857_v12 = vpop.permute.xlu1 %856  ;;  %v1284_v40 = vsel %vm1282_vm12, %v1247_v36, %v855_v11  ;;  %v407_v9 = vsel %vm315_vm2, %v402_v6, %v406_v8 }
  0xa2   : > { %610 = vrot.lane.b32.xlu0 %v524_v1, %s2455_s18  ;;  %v1286_v52 = vsel %vm1282_vm12, %v1249_v37, %v857_v12  ;;  %v1041_v1 = vrot.slane %v2822_v28, 3  ;;  %v415_v12 = vsel %vm315_vm2, %v410_v20, %v414_v21  ;;  %v686_v36 = vrot.slane %v2956_v22, 1 }
  0xa3   : > { %612 = vrot.lane.b32.xlu1 %v2860_v7, %s2455_s18 }
  0xa4   : > { %v985_v26 = vpop.permute.xlu0 %984  ;;  %v1042_v31 = vsel %vm1023_vm5, %v1039_v44, %v1041_v1  ;;  %v1044_v15 = vsel %vm1023_vm5, %v1041_v1, %v1043_v14  ;;  %v942_v1 = vrot.slane %v2956_v22, 2 }
  0xa5   : > { %v987_v33 = vpop.permute.xlu1 %986  ;;  %v1321_v38 = vsel %vm1319_vm13, %v1284_v40, %v985_v26 }
  0xa6   : > { %740 = vrot.lane.b32.xlu0 %v677_v24, %s2459_s26  ;;  %v1323_v55 = vsel %vm1319_vm13, %v1286_v52, %v987_v33  ;;  %v682_v24 = vrot.slane %v2883_v34, 1  ;;  %v529_v33 = vrot.slane %v2941_v50, 1 }
  0xa7   : > { %742 = vrot.lane.b32.xlu1 %v681_v27, %s2459_s26  ;;  %v528_v27 = vsel %vm503_vm0, %v525_v59, %v527_v57 }
  0xa8   : > { %v1062_v43 = vpop.permute.xlu0 %1061  ;;  %v684_v40 = vor.u32 %v683_v2, %v682_v24  ;;  %v2974_v42 = vsel %vm503_vm0, %v527_v57, %v529_v33 }
  0xa9   : > { %v469_v48 = vpop.permute.xlu1 %468  ;;  %v1358_v49 = vsel %vm1356_vm14, %v1321_v38, %v1062_v43  ;;  %v2979_v38 = vld [vmem:[%s2497_s17 + $0x70] sm:$0xff]  }
  0xaa   : > { %817 = vrot.lane.b32.xlu0 %v2801_v30, %s2457_s20  ;;  %2350 = vmatprep.mubr.msk.bf16.mxu0 %vm1413_vm15, %v1358_v49  ;;  %v1103_v47 = vsel %vm1097_vm7, %v2506_v4, %v469_v48  ;;  %v685_v25 = vsel %vm633_vm3, %v2862_v17, %v684_v40  ;;  %v787_v49 = vrot.slane %v2941_v50, 2  ;;  %v2994_v4 = vshll.u32 %v2979_v38, 16 }
  0xab   : > { %819 = vrot.lane.b32.xlu1 %v784_v13, %s2457_s20  ;;  %v2997_v48 = vshrl.u32 %v2979_v38, 16 }
  0xac   : > { %v1064_v54 = vpop.permute.xlu0 %1063  ;;  %v788_v6 = vsel %vm763_vm1, %v785_v46, %v787_v49 }
  0xad   : > { %v2915_v58 = vpop.permute.xlu1 %470  ;;  %v1360_v30 = vsel %vm1356_vm14, %v1323_v55, %v1064_v54 }
  0xae   : > { %870 = vrot.lane.b32.xlu0 %v784_v13, %s2460_s27  ;;  %2351 = vmatmul.mubr.msk.bf16.vlgmr.msra.gmra.mrb[0].mxu0 %vm1413_vm15, %v1360_v30  ;;  %v687_v13 = vrot.slane %v2953_v19, 2  ;;  %v1105_v17 = vsel %vm1097_vm7, %v2519_v16, %v2915_v58  ;;  %v943_v16 = vrot.slane %v2953_v19, 3 }
  0xaf   : > { %872 = vrot.lane.b32.xlu1 %v2911_v61, %s2460_s27 }
  0xb0   : > { %v546_v3 = vpop.permute.xlu0 %545  ;;  %v2976_v59 = vor.u32 %v687_v13, %v686_v36 }
  0xb1   : > { %v548_v10 = vpop.permute.xlu1 %547 }
  0xb2   : > { %1000 = vrot.lane.b32.xlu0 %v937_v0, %s2461_s28  ;;  %v689_v53 = vsel %vm633_vm3, %v684_v40, %v2976_v59  ;;  %v789_v0 = vrot.slane %v2979_v38, 2  ;;  %v422_v40 = vrot.slane %v2953_v19, 1 }
  0xb3   : > { %1002 = vrot.lane.b32.xlu1 %v941_v5, %s2461_s28 }
  0xb4   : > { %v599_v11 = vpop.permute.xlu0 %598  ;;  %v426_v29 = vor.u32 %v2956_v22, %v422_v40  ;;  %v531_v22 = vrot.slane %v2979_v38, 1 }
  0xb5   : > { %v601_v56 = vpop.permute.xlu1 %600 }
  0xb6   : > { %1077 = vrot.lane.b32.xlu0 %v1042_v31, %s2462_s29 }
  0xb7   : > { %484 = vrot.lane.b32.xlu1 %v407_v9, %s2458_s21  ;;  %v947_v9 = vrot.slane %v2994_v4, 3 }
  0xb8   : > { %v729_v44 = vpop.permute.xlu0 %728 }
  0xb9   : > { %v731_v23 = vpop.permute.xlu1 %730 }
  0xba   : > { %1079 = vrot.lane.b32.xlu0 %v1044_v15, %s2462_s29 }
  0xbb   : > { %486 = vrot.lane.b32.xlu1 %v415_v12, %s2458_s21 }
  0xbc   : > { %v806_v26 = vpop.permute.xlu0 %805 }
  0xbd   : > { %v808_v39 = vpop.permute.xlu1 %807 }
  0xbe   : > { %561 = vrot.lane.b32.xlu0 %v2860_v7, %s2456_s19  ;;  %v1140_v7 = vsel %vm1134_vm8, %v1103_v47, %v546_v3  ;;  %v1142_v3 = vsel %vm1134_vm8, %v1105_v17, %v548_v10 }
  0xbf   : > { %563 = vrot.lane.b32.xlu1 %v528_v27, %s2456_s19  ;;  %v1177_v37 = vsel %vm1171_vm9, %v1140_v7, %v599_v11  ;;  %v1179_v58 = vsel %vm1171_vm9, %v1142_v3, %v601_v56  ;;  %v946_v11 = vrot.slane %v2997_v48, 2  ;;  %v944_v56 = vor.u32 %v943_v16, %v942_v1 }
  0xc0   : > { %v859_v41 = vpop.permute.xlu0 %858  ;;  %v1214_v55 = vsel %vm1208_vm10, %v1177_v37, %v729_v44  ;;  %v1216_v10 = vsel %vm1208_vm10, %v1179_v58, %v731_v23  ;;  %v3030_v23 = vsel %vm763_vm1, %v787_v49, %v789_v0 }
  0xc1   : > { %v861_v43 = vpop.permute.xlu1 %860  ;;  %v1251_v30 = vsel %vm1245_vm11, %v1214_v55, %v806_v26  ;;  %v1253_v44 = vsel %vm1245_vm11, %v1216_v10, %v808_v39  ;;  %v3032_v24 = vor.u32 %v947_v9, %v946_v11  ;;  %v945_v26 = vsel %vm893_vm4, %v2913_v62, %v944_v56 }
  0xc2   : > { %614 = vrot.lane.b32.xlu0 %v528_v27, %s2455_s18  ;;  %v1288_v5 = vsel %vm1282_vm12, %v1251_v30, %v859_v41  ;;  %v1290_v46 = vsel %vm1282_vm12, %v1253_v44, %v861_v43  ;;  %v1045_v27 = vrot.slane %v2941_v50, 3  ;;  %v418_v39 = vor.u32 %v2883_v34, %v414_v21  ;;  %v3060_v21 = vld [vmem:[%s2497_s17 + $0x78] sm:$0xff]  }
  0xc3   : > { %616 = vrot.lane.b32.xlu1 %v2974_v42, %s2455_s18  ;;  %v949_v13 = vsel %vm893_vm4, %v944_v56, %v3032_v24  ;;  %v1047_v43 = vrot.slane %v2979_v38, 3  ;;  %v430_v34 = vrot.slane %v2994_v4, 1  ;;  %v3072_v37 = vshll.u32 %v3060_v21, 16 }
  0xc4   : > { %v989_v52 = vpop.permute.xlu0 %988  ;;  %v1046_v62 = vsel %vm1023_vm5, %v1043_v14, %v1045_v27  ;;  %v423_v7 = vsel %vm315_vm2, %v418_v39, %v422_v40  ;;  %v690_v55 = vrot.slane %v2997_v48, 1  ;;  %v532_v30 = vsel %vm503_vm0, %v529_v33, %v531_v22 }
  0xc5   : > { %v991_v54 = vpop.permute.xlu1 %990  ;;  %v1325_v8 = vsel %vm1319_vm13, %v1288_v5, %v989_v52  ;;  %v1048_v14 = vsel %vm1023_vm5, %v1045_v27, %v1047_v43  ;;  %v431_v49 = vsel %vm315_vm2, %v426_v29, %v430_v34  ;;  %v3075_v52 = vshrl.u32 %v3060_v21, 16 }
  0xc6   : > { %744 = vrot.lane.b32.xlu0 %v685_v25, %s2459_s26  ;;  %v1327_v12 = vsel %vm1319_vm13, %v1290_v46, %v991_v54  ;;  %v691_v54 = vrot.slane %v2994_v4, 2  ;;  %v533_v1 = vrot.slane %v3060_v21, 1  ;;  %v695_v5 = vrot.slane %v3072_v37, 2 }
  0xc7   : > { %746 = vrot.lane.b32.xlu1 %v689_v53, %s2459_s26  ;;  %v694_v3 = vrot.slane %v3075_v52, 1  ;;  %v950_v39 = vrot.slane %v3075_v52, 2 }
  0xc8   : > { %v1066_v31 = vpop.permute.xlu0 %1065  ;;  %v692_v16 = vor.u32 %v691_v54, %v690_v55 }
  0xc9   : > { %v473_v20 = vpop.permute.xlu1 %472  ;;  %v1362_v15 = vsel %vm1356_vm14, %v1325_v8, %v1066_v31  ;;  %v3093_v8 = vsel %vm503_vm0, %v531_v22, %v533_v1  ;;  %v3095_v33 = vor.u32 %v695_v5, %v694_v3  ;;  %v3098_v31 = vld [vmem:[%s2497_s17 + $0x80] sm:$0xff]  }
  0xca   : > { %821 = vrot.lane.b32.xlu0 %v2911_v61, %s2457_s20  ;;  %2354 = vmatprep.mubr.msk.bf16.mxu0 %vm1413_vm15, %v1362_v15  ;;  %v1107_v9 = vsel %vm1097_vm7, %v2550_v45, %v473_v20  ;;  %v693_v15 = vsel %vm633_vm3, %v2976_v59, %v692_v16  ;;  %v3113_v45 = vshll.u32 %v3098_v31, 16  ;;  %v3116_v20 = vshrl.u32 %v3098_v31, 16 }
  0xcb   : > { %823 = vrot.lane.b32.xlu1 %v788_v6, %s2457_s20  ;;  %v697_v56 = vsel %vm633_vm3, %v692_v16, %v3095_v33  ;;  %v793_v27 = vrot.slane %v3098_v31, 2  ;;  %v438_v16 = vrot.slane %v3072_v37, 1 }
  0xcc   : > { %v1068_v57 = vpop.permute.xlu0 %1067 }
  0xcd   : > { %v3034_v2 = vpop.permute.xlu1 %474  ;;  %v1364_v61 = vsel %vm1356_vm14, %v1327_v12, %v1068_v57  ;;  %v442_v4 = vor.u32 %v3075_v52, %v438_v16  ;;  %v535_v52 = vrot.slane %v3098_v31, 1 }
  0xce   : > { %874 = vrot.lane.b32.xlu0 %v788_v6, %s2460_s27  ;;  %2355 = vmatmul.mubr.msk.bf16.gmra.mrb[4].mxu0 %vm1413_vm15, %v1364_v61  ;;  %v1109_v61 = vsel %vm1097_vm7, %v2620_v35, %v3034_v2  ;;  %v951_v35 = vrot.slane %v3072_v37, 3 }
  0xcf   : > { %876 = vrot.lane.b32.xlu1 %v3030_v23, %s2460_s27 }
  0xd0   : > { %v550_v36 = vpop.permute.xlu0 %549 }
  0xd1   : > { %v552_v41 = vpop.permute.xlu1 %551  ;;  %v1144_v10 = vsel %vm1134_vm8, %v1107_v9, %v550_v36 }
  0xd2   : > { %1004 = vrot.lane.b32.xlu0 %v945_v26, %s2461_s28  ;;  %v1146_v36 = vsel %vm1134_vm8, %v1109_v61, %v552_v41 }
  0xd3   : > { %1006 = vrot.lane.b32.xlu1 %v949_v13, %s2461_s28 }
  0xd4   : > { %v603_v47 = vpop.permute.xlu0 %602 }
  0xd5   : > { %v605_v19 = vpop.permute.xlu1 %604  ;;  %v1181_v44 = vsel %vm1171_vm9, %v1144_v10, %v603_v47  ;;  %v954_v47 = vrot.slane %v3116_v20, 2 }
  0xd6   : > { %1081 = vrot.lane.b32.xlu0 %v1046_v62, %s2462_s29  ;;  %v1183_v2 = vsel %vm1171_vm9, %v1146_v36, %v605_v19 }
  0xd7   : > { %488 = vrot.lane.b32.xlu1 %v423_v7, %s2458_s21 }
  0xd8   : > { %v733_v25 = vpop.permute.xlu0 %732 }
  0xd9   : > { %v735_v53 = vpop.permute.xlu1 %734  ;;  %v1218_v12 = vsel %vm1208_vm10, %v1181_v44, %v733_v25  ;;  %v952_v25 = vor.u32 %v951_v35, %v950_v39 }
  0xda   : > { %1083 = vrot.lane.b32.xlu0 %v1048_v14, %s2462_s29  ;;  %v1220_v7 = vsel %vm1208_vm10, %v1183_v2, %v735_v53 }
  0xdb   : > { %490 = vrot.lane.b32.xlu1 %v431_v49, %s2458_s21 }
  0xdc   : > { %v810_v17 = vpop.permute.xlu0 %809 }
  0xdd   : > { %v812_v6 = vpop.permute.xlu1 %811  ;;  %v1255_v59 = vsel %vm1245_vm11, %v1218_v12, %v810_v17  ;;  %v953_v17 = vsel %vm893_vm4, %v3032_v24, %v952_v25  ;;  %v698_v12 = vrot.slane %v3116_v20, 1 }
  0xde   : > { %565 = vrot.lane.b32.xlu0 %v2974_v42, %s2456_s19  ;;  %v791_v42 = vrot.slane %v3060_v21, 2  ;;  %v1257_v14 = vsel %vm1245_vm11, %v1220_v7, %v812_v6  ;;  %v434_v6 = vor.u32 %v2997_v48, %v430_v34  ;;  %v446_v48 = vrot.slane %v3113_v45, 1  ;;  %v3179_v34 = vld [vmem:[%s2497_s17 + $0x88] sm:$0xff]  }
  0xdf   : > { %567 = vrot.lane.b32.xlu1 %v532_v30, %s2456_s19  ;;  %v3191_v44 = vshll.u32 %v3179_v34, 16 }
  0xe0   : > { %v863_v58 = vpop.permute.xlu0 %862  ;;  %v792_v26 = vsel %vm763_vm1, %v789_v0, %v791_v42  ;;  %v955_v0 = vrot.slane %v3113_v45, 3  ;;  %v3149_v53 = vsel %vm763_vm1, %v791_v42, %v793_v27  ;;  %v439_v42 = vsel %vm315_vm2, %v434_v6, %v438_v16 }
  0xe1   : > { %v865_v11 = vpop.permute.xlu1 %864  ;;  %v1292_v13 = vsel %vm1282_vm12, %v1255_v59, %v863_v58  ;;  %v536_v59 = vsel %vm503_vm0, %v533_v1, %v535_v52 }
  0xe2   : > { %618 = vrot.lane.b32.xlu0 %v532_v30, %s2455_s18  ;;  %v1294_v19 = vsel %vm1282_vm12, %v1257_v14, %v865_v11  ;;  %v3151_v55 = vor.u32 %v955_v0, %v954_v47  ;;  %v1049_v30 = vrot.slane %v3060_v21, 3  ;;  %v1051_v11 = vrot.slane %v3098_v31, 3 }
  0xe3   : > { %620 = vrot.lane.b32.xlu1 %v3093_v8, %s2455_s18 }
  0xe4   : > { %v993_v46 = vpop.permute.xlu0 %992  ;;  %v957_v5 = vsel %vm893_vm4, %v952_v25, %v3151_v55  ;;  %v1050_v24 = vsel %vm1023_vm5, %v1047_v43, %v1049_v30  ;;  %v1052_v43 = vsel %vm1023_vm5, %v1049_v30, %v1051_v11 }
  0xe5   : > { %v995_v57 = vpop.permute.xlu1 %994  ;;  %v1329_v40 = vsel %vm1319_vm13, %v1292_v13, %v993_v46  ;;  %v3194_v46 = vshrl.u32 %v3179_v34, 16  ;;  %v703_v13 = vrot.slane %v3191_v44, 2 }
  0xe6   : > { %748 = vrot.lane.b32.xlu0 %v693_v15, %s2459_s26  ;;  %v1331_v49 = vsel %vm1319_vm13, %v1294_v19, %v995_v57  ;;  %v447_v15 = vsel %vm315_vm2, %v442_v4, %v446_v48  ;;  %v699_v57 = vrot.slane %v3113_v45, 2 }
  0xe7   : > { %750 = vrot.lane.b32.xlu1 %v697_v56, %s2459_s26  ;;  %v702_v36 = vrot.slane %v3194_v46, 1  ;;  %v958_v6 = vrot.slane %v3194_v46, 2 }
  0xe8   : > { %v1070_v62 = vpop.permute.xlu0 %1069  ;;  %v700_v35 = vor.u32 %v699_v57, %v698_v12  ;;  %v2438_v57 = vld [vmem:[%s2497_s17 + $0x90] ss:$0 sps:$4 sm:$0x11]  }
  0xe9   : > { %v477_v41 = vpop.permute.xlu1 %476  ;;  %v1366_v29 = vsel %vm1356_vm14, %v1329_v40, %v1070_v62  ;;  %v3215_v1 = vor.u32 %v703_v13, %v702_v36  ;;  %v3218_v62 = vld [vmem:[%s2497_s17 + $0x90] sm:$0xff]   ;;  %v1053_v36 = vrot.slane %v3179_v34, 3 }
  0xea   : > { %825 = vrot.lane.b32.xlu0 %v3030_v23, %s2457_s20  ;;  %2358 = vmatprep.mubr.msk.bf16.mxu0 %vm1413_vm15, %v1366_v29  ;;  %v1111_v0 = vsel %vm1097_vm7, %v2648_v51, %v477_v41  ;;  %v701_v29 = vsel %vm633_vm3, %v3095_v33, %v700_v35  ;;  %v707_v51 = vshrl.u32 %v3218_v62, 16  ;;  %v710_v41 = vshll.u32 %v3218_v62, 16 }
  0xeb   : > { %827 = vrot.lane.b32.xlu1 %v792_v26, %s2457_s20  ;;  %v705_v25 = vsel %vm633_vm3, %v700_v35, %v3215_v1  ;;  %v3244_v30 = vrot.slane %v3218_v62, 2  ;;  %v450_v35 = vor.u32 %v3116_v20, %v446_v48 }
  0xec   : > { %v1072_v22 = vpop.permute.xlu0 %1071 }
  0xed   : > { %v3153_v54 = vpop.permute.xlu1 %478  ;;  %v1368_v23 = vsel %vm1356_vm14, %v1331_v49, %v1072_v22 }
  0xee   : > { %878 = vrot.lane.b32.xlu0 %v792_v26, %s2460_s27  ;;  %2359 = vmatmul.mubr.msk.bf16.gmra.mrb[8].mxu0 %vm1413_vm15, %v1368_v23  ;;  %v3204_v26 = vrot.slane %v3179_v34, 1  ;;  %v1113_v23 = vsel %vm1097_vm7, %v2693_v18, %v3153_v54  ;;  %v959_v18 = vrot.slane %v3191_v44, 3 }
  0xef   : > { %880 = vrot.lane.b32.xlu1 %v3149_v53, %s2460_s27 }
  0xf0   : > { %v554_v3 = vpop.permute.xlu0 %553  ;;  %v3213_v40 = vsel %vm503_vm0, %v535_v52, %v3204_v26 }
  0xf1   : > { %v556_v58 = vpop.permute.xlu1 %555  ;;  %v1148_v7 = vsel %vm1134_vm8, %v1111_v0, %v554_v3 }
  0xf2   : > { %1008 = vrot.lane.b32.xlu0 %v953_v17, %s2461_s28  ;;  %v1150_v3 = vsel %vm1134_vm8, %v1113_v23, %v556_v58  ;;  %v963_v58 = vrot.slane %v710_v41, 3 }
  0xf3   : > { %1010 = vrot.lane.b32.xlu1 %v957_v5, %s2461_s28 }
  0xf4   : > { %v607_v9 = vpop.permute.xlu0 %606 }
  0xf5   : > { %v609_v37 = vpop.permute.xlu1 %608  ;;  %v1185_v14 = vsel %vm1171_vm9, %v1148_v7, %v607_v9 }
  0xf6   : > { %1085 = vrot.lane.b32.xlu0 %v1050_v24, %s2462_s29  ;;  %v1187_v54 = vsel %vm1171_vm9, %v1150_v3, %v609_v37  ;;  %v712_v3 = vrot.slane %v710_v41, 2 }
  0xf7   : > { %492 = vrot.lane.b32.xlu1 %v439_v42, %s2458_s21 }
  0xf8   : > { %v737_v10 = vpop.permute.xlu0 %736 }
  0xf9   : > { %v739_v56 = vpop.permute.xlu1 %738  ;;  %v1222_v49 = vsel %vm1208_vm10, %v1185_v14, %v737_v10  ;;  %v960_v10 = vor.u32 %v959_v18, %v958_v6 }
  0xfa   : > { %1087 = vrot.lane.b32.xlu0 %v1052_v43, %s2462_s29  ;;  %v1224_v9 = vsel %vm1208_vm10, %v1187_v54, %v739_v56 }
  0xfb   : > { %494 = vrot.lane.b32.xlu1 %v447_v15, %s2458_s21 }
  0xfc   : > { %v814_v61 = vpop.permute.xlu0 %813 }
  0xfd   : > { %v816_v39 = vpop.permute.xlu1 %815  ;;  %v1259_v17 = vsel %vm1245_vm11, %v1222_v49, %v814_v61  ;;  %v2439_v49 = vld [vmem:[%s2497_s17 + $0x98] ss:$0 sps:$4 sm:$0x11]  }
  0xfe   : > { %569 = vrot.lane.b32.xlu0 %v3093_v8, %s2456_s19  ;;  %v795_v8 = vrot.slane %v3179_v34, 2  ;;  %v1261_v43 = vsel %vm1245_vm11, %v1224_v9, %v816_v39  ;;  %v592_v18 = vrot.slane %v2439_v49, 1 }
  0xff   : > { %571 = vrot.lane.b32.xlu1 %v536_v59, %s2456_s19 }
 0x100   : > { %v867_v2 = vpop.permute.xlu0 %866  ;;  %v796_v33 = vsel %vm763_vm1, %v793_v27, %v795_v8  ;;  %v962_v27 = vrot.slane %v707_v51, 2  ;;  %v3270_v56 = vsel %vm763_vm1, %v795_v8, %v3244_v30  ;;  %v1055_v8 = vrot.slane %v3218_v62, 3 }
 0x101   : > { %v869_v47 = vpop.permute.xlu1 %868  ;;  %v1296_v5 = vsel %vm1282_vm12, %v1259_v17, %v867_v2  ;;  %v454_v2 = vrot.slane %v3191_v44, 1  ;;  %v2440_v44 = vld [vmem:[%s2497_s17 + $0x98] ss:$0 sps:$4 sm:$0x33]  }
 0x102   : > { %622 = vrot.lane.b32.xlu0 %v536_v59, %s2455_s18  ;;  %v1298_v37 = vsel %vm1282_vm12, %v1261_v43, %v869_v47  ;;  %v3272_v12 = vor.u32 %v963_v58, %v962_v27  ;;  %v961_v59 = vsel %vm893_vm4, %v3151_v55, %v960_v10  ;;  %v460_v47 = vshll.u32 %v2438_v57, 16  ;;  %v3324_v58 = vld [vmem:[%s2497_s17 + $0x98] sm:$0xff]   ;;  %v3328_v43 = vld [vmem:[%s2497_s17 + $0xa0] ss:$0 sps:$4 sm:$0x77]  }
 0x103   : > { %624 = vrot.lane.b32.xlu1 %v3213_v40, %s2455_s18  ;;  %v1054_v55 = vsel %vm1023_vm5, %v1051_v11, %v1053_v36  ;;  %v455_v45 = vsel %vm315_vm2, %v450_v35, %v454_v2  ;;  %v458_v20 = vor.u32 %v3194_v46, %v454_v2  ;;  %v1056_v14 = vsel %vm1023_vm5, %v1053_v36, %v1055_v8 }
 0x104   : > { %v997_v19 = vpop.permute.xlu0 %996  ;;  %v965_v39 = vsel %vm893_vm4, %v960_v10, %v3272_v12  ;;  %v462_v48 = vrot.slane %v460_v47, 1  ;;  %v719_v23 = vshll.u32 %v2440_v44, 16  ;;  %v590_v46 = vrot.slane %v3218_v62, 1 }
 0x105   : > { %v999_v22 = vpop.permute.xlu1 %998  ;;  %v1333_v16 = vsel %vm1319_vm13, %v1296_v5, %v997_v19  ;;  %v799_v10 = vrot.slane %v2440_v44, 2 }
 0x106   : > { %752 = vrot.lane.b32.xlu0 %v701_v29, %s2459_s26  ;;  %v1335_v15 = vsel %vm1319_vm13, %v1298_v37, %v999_v22  ;;  %v463_v11 = vsel %vm315_vm2, %v458_v20, %v462_v48  ;;  %v716_v22 = vshrl.u32 %v2440_v44, 16  ;;  %v593_v9 = vsel %vm503_vm0, %v590_v46, %v592_v18 }
 0x107   : > { %754 = vrot.lane.b32.xlu1 %v705_v25, %s2459_s26  ;;  %v539_v25 = vrot.slane %v2438_v57, 1  ;;  %v967_v57 = vshrl.u32 %v3324_v58, 16  ;;  %v800_v2 = vsel %vm763_vm1, %v3244_v30, %v799_v10 }
 0x108   : > { %v1074_v24 = vpop.permute.xlu0 %1073  ;;  %v718_v54 = vrot.slane %v716_v22, 1 }
 0x109   : > { %v3258_v42 = vpop.permute.xlu1 %480  ;;  %v1370_v4 = vsel %vm1356_vm14, %v1333_v16, %v1074_v24  ;;  %v540_v6 = vsel %vm503_vm0, %v3204_v26, %v539_v25  ;;  %v721_v16 = vrot.slane %v719_v23, 2  ;;  %v969_v48 = vrot.slane %v967_v57, 2 }
 0x10a   : > { %829 = vrot.lane.b32.xlu0 %v3149_v53, %s2457_s20  ;;  %2362 = vmatprep.mubr.msk.bf16.mxu0 %vm1413_vm15, %v1370_v4 }
 0x10b   : > { %831 = vrot.lane.b32.xlu1 %v796_v33, %s2457_s20  ;;  %v722_v4 = vor.u32 %v721_v16, %v718_v54 }
 0x10c   : > { %v1076_v52 = vpop.permute.xlu0 %1075 }
 0x10d   : > { %v3275_v61 = vpop.permute.xlu1 %482  ;;  %v1372_v53 = vsel %vm1356_vm14, %v1335_v15, %v1076_v52  ;;  %v2442_v15 = vld [vmem:[%s2497_s17 + $0xa0] ss:$0 sps:$4 sm:$0x33]  }
 0x10e   : > { %882 = vrot.lane.b32.xlu0 %v796_v33, %s2460_s27  ;;  %2363 = vmatmul.mubr.msk.bf16.gmra.mrb[12].mxu0 %vm1413_vm15, %v1372_v53  ;;  %v709_v33 = vrot.slane %v707_v51, 1  ;;  %v591_v51 = vsel %vm503_vm0, %v3204_v26, %v590_v46  ;;  %v970_v53 = vshll.u32 %v3324_v58, 16 }
 0x10f   : > { %884 = vrot.lane.b32.xlu1 %v3270_v56, %s2460_s27 }
 0x110   : > { %v558_v13 = vpop.permute.xlu0 %557  ;;  %v713_v27 = vor.u32 %v712_v3, %v709_v33  ;;  %v972_v44 = vrot.slane %v970_v53, 3 }
 0x111   : > { %v3291_v0 = vpop.permute.xlu1 %559 }
 0x112   : > { %1012 = vrot.lane.b32.xlu0 %v961_v59, %s2461_s28  ;;  %v714_v52 = vsel %vm633_vm3, %v3215_v1, %v713_v27  ;;  %v1117_v1 = vsel %vm1097_vm7, %v2750_v60, %v3275_v61  ;;  %v973_v46 = vor.u32 %v972_v44, %v969_v48 }
 0x113   : > { %1014 = vrot.lane.b32.xlu1 %v965_v39, %s2461_s28  ;;  %v723_v39 = vsel %vm633_vm3, %v713_v27, %v722_v4 }
 0x114   : > { %v611_v7 = vpop.permute.xlu0 %610 }
 0x115   : > { %v613_v29 = vpop.permute.xlu1 %612 }
 0x116   : > { %1089 = vrot.lane.b32.xlu0 %v1054_v55, %s2462_s29  ;;  %v850_v55 = vrot.slane %v3324_v58, 2 }
 0x117   : > { %496 = vrot.lane.b32.xlu1 %v455_v45, %s2458_s21  ;;  %v1154_v45 = vsel %vm1134_vm8, %v1117_v1, %v3291_v0 }
 0x118   : > { %v741_v19 = vpop.permute.xlu0 %740 }
 0x119   : > { %v743_v17 = vpop.permute.xlu1 %742 }
 0x11a   : > { %1091 = vrot.lane.b32.xlu0 %v1056_v14, %s2462_s29  ;;  %v1191_v14 = vsel %vm1171_vm9, %v1154_v45, %v613_v29  ;;  %v851_v29 = vsel %vm763_vm1, %v3244_v30, %v850_v55  ;;  %v1057_v30 = vrot.slane %v3324_v58, 3 }
 0x11b   : > { %498 = vrot.lane.b32.xlu1 %v463_v11, %s2458_s21  ;;  %v1228_v25 = vsel %vm1208_vm10, %v1191_v14, %v743_v17 }
 0x11c   : > { %v818_v5 = vpop.permute.xlu0 %817  ;;  %v1058_v27 = vsel %vm1023_vm5, %v1055_v8, %v1057_v30 }
 0x11d   : > { %v820_v24 = vpop.permute.xlu1 %819 }
 0x11e   : > { %573 = vrot.lane.b32.xlu0 %v3213_v40, %s2456_s19  ;;  %v1115_v40 = vsel %vm1097_vm7, %v2714_v32, %v3258_v42  ;;  %v976_v32 = vshrl.u32 %v3328_v43, 16  ;;  %v979_v42 = vshll.u32 %v3328_v43, 16  ;;  %v1265_v0 = vsel %vm1245_vm11, %v1228_v25, %v820_v24 }
 0x11f   : > { %575 = vrot.lane.b32.xlu1 %v540_v6, %s2456_s19  ;;  %v1152_v26 = vsel %vm1134_vm8, %v1115_v40, %v558_v13  ;;  %v1059_v24 = vrot.slane %v3328_v43, 3 }
 0x120   : > { %v871_v41 = vpop.permute.xlu0 %870  ;;  %v1189_v59 = vsel %vm1171_vm9, %v1152_v26, %v611_v7  ;;  %v852_v7 = vrot.slane %v2442_v15, 2  ;;  %v981_v11 = vrot.slane %v979_v42, 3  ;;  %v2446_v15 = vld [vmem:[%s2497_s17 + $0x50] sm:$0xff]  }
 0x121   : > { %v873_v37 = vpop.permute.xlu1 %872  ;;  %v1226_v13 = vsel %vm1208_vm10, %v1189_v59, %v741_v19  ;;  %v978_v19 = vrot.slane %v976_v32, 2 }
 0x122   : > { %626 = vrot.lane.b32.xlu0 %v591_v51, %s2455_s18  ;;  %v1263_v47 = vsel %vm1245_vm11, %v1226_v13, %v818_v5  ;;  %v1302_v23 = vsel %vm1282_vm12, %v1265_v0, %v873_v37  ;;  %v853_v3 = vsel %vm763_vm1, %v850_v55, %v852_v7 }
 0x123   : > { %628 = vrot.lane.b32.xlu1 %v593_v9, %s2455_s18  ;;  %v1300_v20 = vsel %vm1282_vm12, %v1263_v47, %v871_v41  ;;  %v982_v5 = vor.u32 %v981_v11, %v978_v19 }
 0x124   : > { %v1001_v36 = vpop.permute.xlu0 %1000 }
 0x125   : > { %v1003_v35 = vpop.permute.xlu1 %1002  ;;  %v1337_v60 = vsel %vm1319_vm13, %v1300_v20, %v1001_v36  ;;  %v983_v16 = vsel %vm893_vm4, %v973_v46, %v982_v5 }
 0x126   : > { %756 = vrot.lane.b32.xlu0 %v714_v52, %s2459_s26  ;;  %v1339_v17 = vsel %vm1319_vm13, %v1302_v23, %v1003_v35 }
 0x127   : > { %758 = vrot.lane.b32.xlu1 %v723_v39, %s2459_s26 }
 0x128   : > { %v1078_v61 = vpop.permute.xlu0 %1077 }
 0x129   : > { %v485_v49 = vpop.permute.xlu1 %484  ;;  %v1374_v22 = vsel %vm1356_vm14, %v1337_v60, %v1078_v61 }
 0x12a   : > { %833 = vrot.lane.b32.xlu0 %v3270_v56, %s2457_s20  ;;  %2366 = vmatprep.mubr.msk.bf16.mxu0 %vm1413_vm15, %v1374_v22  ;;  %v974_v56 = vsel %vm893_vm4, %v3272_v12, %v973_v46  ;;  %v1060_v12 = vsel %vm1023_vm5, %v1057_v30, %v1059_v24  ;;  %v1119_v26 = vsel %vm1097_vm7, %v2446_v15, %v485_v49 }
 0x12b   : > { %835 = vrot.lane.b32.xlu1 %v800_v2, %s2457_s20 }
 0x12c   : > { %v1080_v33 = vpop.permute.xlu0 %1079 }
 0x12d   : > { %v487_v6 = vpop.permute.xlu1 %486  ;;  %v1376_v18 = vsel %vm1356_vm14, %v1339_v17, %v1080_v33 }
 0x12e   : > { %886 = vrot.lane.b32.xlu0 %v851_v29, %s2460_s27  ;;  %2367 = vmatmul.mubr.msk.bf16.gmra.mrb[16].mxu0 %vm1413_vm15, %v1376_v18  ;;  %v1121_v59 = vsel %vm1097_vm7, %v2822_v28, %v487_v6 }
 0x12f   : > { %888 = vrot.lane.b32.xlu1 %v853_v3, %s2460_s27 }
 0x130   : > { %v562_v54 = vpop.permute.xlu0 %561 }
 0x131   : > { %v564_v51 = vpop.permute.xlu1 %563  ;;  %v1156_v62 = vsel %vm1134_vm8, %v1119_v26, %v562_v54 }
 0x132   : > { %1016 = vrot.lane.b32.xlu0 %v974_v56, %s2461_s28  ;;  %v1158_v39 = vsel %vm1134_vm8, %v1121_v59, %v564_v51 }
 0x133   : > { %1018 = vrot.lane.b32.xlu1 %v983_v16, %s2461_s28 }
 0x134   : > { %v615_v41 = vpop.permute.xlu0 %614 }
 0x135   : > { %v617_v9 = vpop.permute.xlu1 %616  ;;  %v1193_v8 = vsel %vm1171_vm9, %v1156_v62, %v615_v41 }
 0x136   : > { %1093 = vrot.lane.b32.xlu0 %v1058_v27, %s2462_s29  ;;  %v1195_v42 = vsel %vm1171_vm9, %v1158_v39, %v617_v9 }
 0x137   : > { %1095 = vrot.lane.b32.xlu1 %v1060_v12, %s2462_s29 }
 0x138   : > { %v745_v58 = vpop.permute.xlu0 %744 }
 0x139   : > { %v747_v4 = vpop.permute.xlu1 %746  ;;  %v1230_v57 = vsel %vm1208_vm10, %v1193_v8, %v745_v58 }
 0x13a   : > { %v1232_v2 = vsel %vm1208_vm10, %v1195_v42, %v747_v4 }
 0x13c   : > { %v822_v43 = vpop.permute.xlu0 %821 }
 0x13d   : > { %v824_v37 = vpop.permute.xlu1 %823  ;;  %v1267_v36 = vsel %vm1245_vm11, %v1230_v57, %v822_v43 }
 0x13e   : > { %v1269_v55 = vsel %vm1245_vm11, %v1232_v2, %v824_v37 }
 0x140   : > { %v875_v10 = vpop.permute.xlu0 %874 }
 0x141   : > { %v877_v40 = vpop.permute.xlu1 %876  ;;  %v1304_v32 = vsel %vm1282_vm12, %v1267_v36, %v875_v10 }
 0x142   : > { %v1306_v28 = vsel %vm1282_vm12, %v1269_v55, %v877_v40 }
 0x144   : > { %v1005_v52 = vpop.permute.xlu0 %1004 }
 0x145   : > { %v1007_v53 = vpop.permute.xlu1 %1006  ;;  %v1341_v13 = vsel %vm1319_vm13, %v1304_v32, %v1005_v52 }
 0x146   : > { %v1343_v7 = vsel %vm1319_vm13, %v1306_v28, %v1007_v53 }
 0x148   : > { %v1082_v35 = vpop.permute.xlu0 %1081 }
 0x149   : > { %v489_v1 = vpop.permute.xlu1 %488  ;;  %v1378_v47 = vsel %vm1356_vm14, %v1341_v13, %v1082_v35 }
 0x14a   : > { %2370 = vmatprep.mubr.msk.bf16.mxu1 %vm1413_vm15, %v1378_v47  ;;  %v1123_v23 = vsel %vm1097_vm7, %v2865_v63, %v489_v1 }
 0x14c   : > { %v1084_v45 = vpop.permute.xlu0 %1083 }
 0x14d   : > { %v491_v20 = vpop.permute.xlu1 %490  ;;  %v1380_v48 = vsel %vm1356_vm14, %v1343_v7, %v1084_v45 }
 0x14e   : > { %2371 = vmatmul.mubr.msk.bf16.vlgmr.msra.gmra.mrb[0].mxu1 %vm1413_vm15, %v1380_v48  ;;  %v1125_v5 = vsel %vm1097_vm7, %v2941_v50, %v491_v20 }
 0x150   : > { %v566_v44 = vpop.permute.xlu0 %565 }
 0x151   : > { %v568_v14 = vpop.permute.xlu1 %567  ;;  %v1160_v29 = vsel %vm1134_vm8, %v1123_v23, %v566_v44 }
 0x152   : > { %v1162_v18 = vsel %vm1134_vm8, %v1125_v5, %v568_v14 }
 0x154   : > { %v619_v60 = vpop.permute.xlu0 %618 }
 0x155   : > { %v621_v61 = vpop.permute.xlu1 %620  ;;  %v1197_v46 = vsel %vm1171_vm9, %v1160_v29, %v619_v60 }
 0x156   : > { %v1199_v30 = vsel %vm1171_vm9, %v1162_v18, %v621_v61 }
 0x158   : > { %v749_v19 = vpop.permute.xlu0 %748 }
 0x159   : > { %v751_v11 = vpop.permute.xlu1 %750  ;;  %v1234_v33 = vsel %vm1208_vm10, %v1197_v46, %v749_v19 }
 0x15a   : > { %v1236_v16 = vsel %vm1208_vm10, %v1199_v30, %v751_v11 }
 0x15c   : > { %v826_v25 = vpop.permute.xlu0 %825 }
 0x15d   : > { %v828_v49 = vpop.permute.xlu1 %827  ;;  %v1271_v6 = vsel %vm1245_vm11, %v1234_v33, %v826_v25 }
 0x15e   : > { %v1273_v27 = vsel %vm1245_vm11, %v1236_v16, %v828_v49 }
 0x160   : > { %v879_v22 = vpop.permute.xlu0 %878 }
 0x161   : > { %v881_v0 = vpop.permute.xlu1 %880  ;;  %v1308_v56 = vsel %vm1282_vm12, %v1271_v6, %v879_v22 }
 0x162   : > { %v1310_v50 = vsel %vm1282_vm12, %v1273_v27, %v881_v0 }
 0x164   : > { %v1009_v17 = vpop.permute.xlu0 %1008 }
 0x165   : > { %v1011_v3 = vpop.permute.xlu1 %1010  ;;  %v1345_v63 = vsel %vm1319_vm13, %v1308_v56, %v1009_v17 }
 0x166   : > { %v1347_v41 = vsel %vm1319_vm13, %v1310_v50, %v1011_v3 }
 0x168   : > { %v1086_v54 = vpop.permute.xlu0 %1085 }
 0x169   : > { %v493_v24 = vpop.permute.xlu1 %492  ;;  %v1382_v51 = vsel %vm1356_vm14, %v1345_v63, %v1086_v54 }
 0x16a   : > { %2374 = vmatprep.mubr.msk.bf16.mxu1 %vm1413_vm15, %v1382_v51  ;;  %v1127_v53 = vsel %vm1097_vm7, %v2979_v38, %v493_v24 }
 0x16c   : > { %v1088_v12 = vpop.permute.xlu0 %1087 }
 0x16d   : > { %v495_v9 = vpop.permute.xlu1 %494  ;;  %v1384_v58 = vsel %vm1356_vm14, %v1347_v41, %v1088_v12 }
 0x16e   : > { %2375 = vmatmul.mubr.msk.bf16.gmra.mrb[4].mxu1 %vm1413_vm15, %v1384_v58  ;;  %v1129_v38 = vsel %vm1097_vm7, %v3060_v21, %v495_v9 }
 0x170   : > { %v570_v4 = vpop.permute.xlu0 %569 }
 0x171   : > { %v572_v43 = vpop.permute.xlu1 %571  ;;  %v1164_v36 = vsel %vm1134_vm8, %v1127_v53, %v570_v4 }
 0x172   : > { %v1166_v47 = vsel %vm1134_vm8, %v1129_v38, %v572_v43 }
 0x174   : > { %v623_v37 = vpop.permute.xlu0 %622 }
 0x175   : > { %v625_v10 = vpop.permute.xlu1 %624  ;;  %v1201_v32 = vsel %vm1171_vm9, %v1164_v36, %v623_v37 }
 0x176   : > { %v1203_v28 = vsel %vm1171_vm9, %v1166_v47, %v625_v10 }
 0x178   : > { %v753_v40 = vpop.permute.xlu0 %752 }
 0x179   : > { %v755_v15 = vpop.permute.xlu1 %754  ;;  %v1238_v35 = vsel %vm1208_vm10, %v1201_v32, %v753_v40 }
 0x17a   : > { %v1240_v20 = vsel %vm1208_vm10, %v1203_v28, %v755_v15 }
 0x17c   : > { %v830_v26 = vpop.permute.xlu0 %829 }
 0x17d   : > { %v832_v62 = vpop.permute.xlu1 %831  ;;  %v1275_v1 = vsel %vm1245_vm11, %v1238_v35, %v830_v26 }
 0x17e   : > { %v1277_v14 = vsel %vm1245_vm11, %v1240_v20, %v832_v62 }
 0x180   : > { %v883_v8 = vpop.permute.xlu0 %882 }
 0x181   : > { %v885_v52 = vpop.permute.xlu1 %884  ;;  %v2352_v57 = vpop.f32.mrb[0].mxu0  ;;  %v1312_v55 = vsel %vm1282_vm12, %v1275_v1, %v883_v8 }
 0x182   : > { %1633 = vst.msk [vmem:[#allocation2 + $0x10] sm:$0xff] %vm1134_vm8, %v2352_v57  ;;  %v1488_v59 = vpop.f32.mrb[1].mxu0  ;;  %v1314_v21 = vsel %vm1282_vm12, %v1277_v14, %v885_v52 }
 0x183   : > { %1631 = vst.msk [vmem:[#allocation2] sm:$0xff] %vm1134_vm8, %v1488_v59  ;;  %v2353_v39 = vpop.f32.mrb[2].mxu0 }
 0x184   : > { %1634 = vst.msk [vmem:[#allocation2 + $0x18] sm:$0xff] %vm1134_vm8, %v2353_v39  ;;  %v1491_v42 = vpop.f32.mrb[3].mxu0  ;;  %v1013_v13 = vpop.permute.xlu0 %1012 }
 0x185   : > { %v1015_v2 = vpop.permute.xlu1 %1014  ;;  %1632 = vst.msk [vmem:[#allocation2 + $0x8] sm:$0xff] %vm1134_vm8, %v1491_v42  ;;  %v1349_v7 = vsel %vm1319_vm13, %v1312_v55, %v1013_v13 }
 0x186   : > { %v1351_v60 = vsel %vm1319_vm13, %v1314_v21, %v1015_v2 }
 0x188   : > { %v1090_v45 = vpop.permute.xlu0 %1089 }
 0x189   : > { %v497_v48 = vpop.permute.xlu1 %496  ;;  %v1386_v44 = vsel %vm1356_vm14, %v1349_v7, %v1090_v45  ;;  %v3499_v55 = vld [vmem:[#allocation2 + $0x10] sm:$0xff] }
 0x18a   : > { %2378 = vmatprep.mubr.msk.bf16.mxu1 %vm1413_vm15, %v1386_v44  ;;  %v1131_v6 = vsel %vm1097_vm7, %v3098_v31, %v497_v48  ;;  %v3491_v2 = vld [vmem:[#allocation2] sm:$0xff]  ;;  %v1782_v20 = vmul.f32 %v3499_v55, %v3499_v55 }
 0x18b   : > { %v1780_v1 = vmul.f32 %v3491_v2, %v3491_v2  ;;  %v1703_v28 = vsel %vm1134_vm8, %v3491_v2, 0.0  ;;  %v3507_v44 = vld [vmem:[#allocation2 + $0x18] sm:$0xff] }
 0x18c   : > { %v1092_v61 = vpop.permute.xlu0 %1091  ;;  %v3489_v35 = vld [vmem:[#allocation2 + $0x8] sm:$0xff] }
 0x18d   : > { %v499_v19 = vpop.permute.xlu1 %498  ;;  %v1388_v11 = vsel %vm1356_vm14, %v1351_v60, %v1092_v61  ;;  %v1781_v38 = vmul.f32 %v3489_v35, %v3489_v35  ;;  %v1704_v47 = vsel %vm1134_vm8, %v3489_v35, 0.0  ;;  %v1816_v48 = vsel %vm1134_vm8, %v1780_v1, 0.0 }
 0x18e   : > { %2379 = vmatmul.mubr.msk.bf16.gmra.mrb[8].mxu1 %vm1413_vm15, %v1388_v11  ;;  %v1133_v56 = vsel %vm1097_vm7, %v3179_v34, %v499_v19  ;;  %v1705_v45 = vadd.f32 %v1704_v47, %v1703_v28  ;;  %v1706_v60 = vsel %vm1134_vm8, %v3499_v55, 0.0  ;;  %v1819_v11 = vsel %vm1134_vm8, %v1782_v20, 0.0 }
 0x18f   : > { %v1817_v7 = vsel %vm1134_vm8, %v1781_v38, 0.0 }
 0x190   : > { %v574_v25 = vpop.permute.xlu0 %573  ;;  %v1818_v14 = vadd.f32 %v1817_v7, %v1816_v48  ;;  %v1707_v61 = vadd.f32 %v1706_v60, %v1705_v45 }
 0x191   : > { %v576_v49 = vpop.permute.xlu1 %575  ;;  %v1168_v30 = vsel %vm1134_vm8, %v1131_v6, %v574_v25  ;;  %v1783_v25 = vmul.f32 %v3507_v44, %v3507_v44 }
 0x192   : > { %v1170_v54 = vsel %vm1134_vm8, %v1133_v56, %v576_v49 }
 0x194   : > { %v627_v22 = vpop.permute.xlu0 %626 }
 0x195   : > { %v629_v0 = vpop.permute.xlu1 %628  ;;  %v1205_v16 = vsel %vm1171_vm9, %v1168_v30, %v627_v22 }
 0x196   : > { %v1207_v31 = vsel %vm1171_vm9, %v1170_v54, %v629_v0  ;;  %v1820_v0 = vadd.f32 %v1819_v11, %v1818_v14 }
 0x198   : > { %v757_v23 = vpop.permute.xlu0 %756 }
 0x199   : > { %v759_v29 = vpop.permute.xlu1 %758  ;;  %v1242_v27 = vsel %vm1208_vm10, %v1205_v16, %v757_v23 }
 0x19a   : > { %v1244_v34 = vsel %vm1208_vm10, %v1207_v31, %v759_v29 }
 0x19c   : > { %v834_v46 = vpop.permute.xlu0 %833 }
 0x19d   : > { %v836_v17 = vpop.permute.xlu1 %835  ;;  %v1279_v41 = vsel %vm1245_vm11, %v1242_v27, %v834_v46  ;;  %v1708_v46 = vsel %vm1134_vm8, %v3507_v44, 0.0 }
 0x19e   : > { %v1281_v12 = vsel %vm1245_vm11, %v1244_v34, %v836_v17 }
 0x1a0   : > { %v887_v33 = vpop.permute.xlu0 %886 }
 0x1a1   : > { %v889_v3 = vpop.permute.xlu1 %888  ;;  %v2356_v5 = vpop.f32.mrb[4].mxu0  ;;  %v1316_v9 = vsel %vm1282_vm12, %v1279_v41, %v887_v33 }
 0x1a2   : > { %1637 = vst.msk [vmem:[#allocation2 + $0x30] sm:$0xff] %vm1134_vm8, %v2356_v5  ;;  %v1504_v18 = vpop.f32.mrb[5].mxu0  ;;  %v1318_v58 = vsel %vm1282_vm12, %v1281_v12, %v889_v3  ;;  %v1709_v3 = vadd.f32 %v1708_v46, %v1707_v61  ;;  %v1821_v5 = vsel %vm1134_vm8, %v1783_v25, 0.0 }
 0x1a3   : > { %1635 = vst.msk [vmem:[#allocation2 + $0x20] sm:$0xff] %vm1134_vm8, %v1504_v18  ;;  %v2357_v63 = vpop.f32.mrb[6].mxu0  ;;  %v1822_v30 = vadd.f32 %v1821_v5, %v1820_v0 }
 0x1a4   : > { %1638 = vst.msk [vmem:[#allocation2 + $0x38] sm:$0xff] %vm1134_vm8, %v2357_v63  ;;  %v1507_v24 = vpop.f32.mrb[7].mxu0  ;;  %v1017_v51 = vpop.permute.xlu0 %1016 }
 0x1a5   : > { %v1019_v50 = vpop.permute.xlu1 %1018  ;;  %1636 = vst.msk [vmem:[#allocation2 + $0x28] sm:$0xff] %vm1134_vm8, %v1507_v24  ;;  %v1353_v4 = vsel %vm1319_vm13, %v1316_v9, %v1017_v51 }
 0x1a6   : > { %v1355_v37 = vsel %vm1319_vm13, %v1318_v58, %v1019_v50 }
 0x1a8   : > { %v1094_v43 = vpop.permute.xlu0 %1093 }
 0x1a9   : > { %v1096_v10 = vpop.permute.xlu1 %1095  ;;  %v1390_v40 = vsel %vm1356_vm14, %v1353_v4, %v1094_v43  ;;  %v3534_v54 = vld [vmem:[#allocation2 + $0x30] sm:$0xff] }
 0x1aa   : > { %v1392_v15 = vsel %vm1356_vm14, %v1355_v37, %v1096_v10  ;;  %2382 = vmatprep.mubr.msk.bf16.mxu1 %vm1413_vm15, %v1390_v40  ;;  %v3509_v21 = vld [vmem:[#allocation2 + $0x20] sm:$0xff]  ;;  %v1786_v31 = vmul.f32 %v3534_v54, %v3534_v54  ;;  %v1714_v41 = vsel %vm1134_vm8, %v3534_v54, 0.0 }
 0x1ab   : > { %2383 = vmatmul.mubr.msk.bf16.gmra.mrb[12].mxu1 %vm1413_vm15, %v1392_v15  ;;  %v1784_v49 = vmul.f32 %v3509_v21, %v3509_v21  ;;  %v1710_v17 = vsel %vm1134_vm8, %v3509_v21, 0.0  ;;  %v3539_v27 = vld [vmem:[#allocation2 + $0x38] sm:$0xff] }
 0x1ac   : > { %v3519_v23 = vld [vmem:[#allocation2 + $0x28] sm:$0xff]  ;;  %v1711_v56 = vadd.f32 %v1710_v17, %v1709_v3  ;;  %v1827_v9 = vsel %vm1134_vm8, %v1786_v31, 0.0  ;;  %v1787_v58 = vmul.f32 %v3539_v27, %v3539_v27  ;;  %v1716_v10 = vsel %vm1134_vm8, %v3539_v27, 0.0 }
 0x1ad   : > { %v1823_v6 = vsel %vm1134_vm8, %v1784_v49, 0.0  ;;  %v1785_v18 = vmul.f32 %v3519_v23, %v3519_v23  ;;  %v1712_v63 = vsel %vm1134_vm8, %v3519_v23, 0.0 }
 0x1ae   : > { %v1824_v16 = vadd.f32 %v1823_v6, %v1822_v30  ;;  %v1713_v51 = vadd.f32 %v1712_v63, %v1711_v56 }
 0x1af   : > { %v1825_v24 = vsel %vm1134_vm8, %v1785_v18, 0.0 }
 0x1b0   : > { %v1826_v50 = vadd.f32 %v1825_v24, %v1824_v16  ;;  %v1715_v12 = vadd.f32 %v1714_v41, %v1713_v51 }
 0x1b2   : > { %v1828_v43 = vadd.f32 %v1827_v9, %v1826_v50  ;;  %v1717_v15 = vadd.f32 %v1716_v10, %v1715_v12 }
 0x1c1   : > { %v2360_v26 = vpop.f32.mrb[8].mxu0 }
 0x1c2   : > { %1641 = vst.msk [vmem:[#allocation2 + $0x50] sm:$0xff] %vm1134_vm8, %v2360_v26  ;;  %v1520_v62 = vpop.f32.mrb[9].mxu0  ;;  %v1829_v26 = vsel %vm1134_vm8, %v1787_v58, 0.0 }
 0x1c3   : > { %1639 = vst.msk [vmem:[#allocation2 + $0x40] sm:$0xff] %vm1134_vm8, %v1520_v62  ;;  %v2361_v8 = vpop.f32.mrb[10].mxu0 }
 0x1c4   : > { %1642 = vst.msk [vmem:[#allocation2 + $0x58] sm:$0xff] %vm1134_vm8, %v2361_v8  ;;  %v1523_v52 = vpop.f32.mrb[11].mxu0 }
 0x1c5   : > { %1640 = vst.msk [vmem:[#allocation2 + $0x48] sm:$0xff] %vm1134_vm8, %v1523_v52 }
 0x1ca   : > { %v3541_v34 = vld [vmem:[#allocation2 + $0x40] sm:$0xff] }
 0x1cb   : > { %v1788_v4 = vmul.f32 %v3541_v34, %v3541_v34  ;;  %v1718_v40 = vsel %vm1134_vm8, %v3541_v34, 0.0 }
 0x1cc   : > { %v3550_v37 = vld [vmem:[#allocation2 + $0x48] sm:$0xff]  ;;  %v1719_v52 = vadd.f32 %v1718_v40, %v1717_v15 }
 0x1cd   : > { %v1831_v62 = vsel %vm1134_vm8, %v1788_v4, 0.0  ;;  %v1789_v8 = vmul.f32 %v3550_v37, %v3550_v37 }
 0x1e1   : > { %v2364_v57 = vpop.f32.mrb[12].mxu0 }
 0x1e2   : > { %1645 = vst.msk [vmem:[#allocation2 + $0x70] sm:$0xff] %vm1134_vm8, %v2364_v57  ;;  %v1536_v53 = vpop.f32.mrb[13].mxu0  ;;  %v1830_v57 = vadd.f32 %v1829_v26, %v1828_v43 }
 0x1e3   : > { %1643 = vst.msk [vmem:[#allocation2 + $0x60] sm:$0xff] %vm1134_vm8, %v1536_v53  ;;  %v2365_v59 = vpop.f32.mrb[14].mxu0  ;;  %v1720_v53 = vsel %vm1134_vm8, %v3550_v37, 0.0 }
 0x1e4   : > { %1646 = vst.msk [vmem:[#allocation2 + $0x78] sm:$0xff] %vm1134_vm8, %v2365_v59  ;;  %v1539_v36 = vpop.f32.mrb[15].mxu0  ;;  %v3562_v59 = vld [vmem:[#allocation2 + $0x50] sm:$0xff] }
 0x1e5   : > { %1644 = vst.msk [vmem:[#allocation2 + $0x68] sm:$0xff] %vm1134_vm8, %v1539_v36  ;;  %v1832_v36 = vadd.f32 %v1831_v62, %v1830_v57  ;;  %v1722_v47 = vsel %vm1134_vm8, %v3562_v59, 0.0 }
 0x1e9   : > { %v3593_v5 = vld [vmem:[#allocation2 + $0x70] sm:$0xff] }
 0x1ea   : > { %v3569_v1 = vld [vmem:[#allocation2 + $0x60] sm:$0xff]  ;;  %v1794_v30 = vmul.f32 %v3593_v5, %v3593_v5  ;;  %v1730_v51 = vsel %vm1134_vm8, %v3593_v5, 0.0 }
 0x1eb   : > { %v1792_v20 = vmul.f32 %v3569_v1, %v3569_v1  ;;  %v1726_v61 = vsel %vm1134_vm8, %v3569_v1, 0.0  ;;  %v3599_v63 = vld [vmem:[#allocation2 + $0x78] sm:$0xff] }
 0x1ec   : > { %v3578_v14 = vld [vmem:[#allocation2 + $0x68] sm:$0xff]  ;;  %v1843_v50 = vsel %vm1134_vm8, %v1794_v30, 0.0  ;;  %v1795_v41 = vmul.f32 %v3599_v63, %v3599_v63  ;;  %v1732_v4 = vsel %vm1134_vm8, %v3599_v63, 0.0 }
 0x1ed   : > { %v1839_v49 = vsel %vm1134_vm8, %v1792_v20, 0.0 }
 0x1ee   : > { %v1845_v40 = vsel %vm1134_vm8, %v1795_v41, 0.0 }
 0x201   : > { %v2368_v39 = vpop.f32.mrb[16].mxu0 }
 0x202   : > { %1649 = vst.msk [vmem:[#allocation2 + $0x90] sm:$0xff] %vm1134_vm8, %v2368_v39  ;;  %v1552_v32 = vpop.f32.mrb[17].mxu0  ;;  %v1833_v39 = vsel %vm1134_vm8, %v1789_v8, 0.0 }
 0x203   : > { %1647 = vst.msk [vmem:[#allocation2 + $0x80] sm:$0xff] %vm1134_vm8, %v1552_v32  ;;  %v2369_v42 = vpop.f32.mrb[18].mxu0  ;;  %v1721_v32 = vadd.f32 %v1720_v53, %v1719_v52  ;;  %v1834_v38 = vadd.f32 %v1833_v39, %v1832_v36 }
 0x204   : > { %1650 = vst.msk [vmem:[#allocation2 + $0x98] sm:$0xff] %vm1134_vm8, %v2369_v42  ;;  %v1555_v13 = vpop.f32.mrb[19].mxu0  ;;  %v1790_v42 = vmul.f32 %v3562_v59, %v3562_v59 }
 0x205   : > { %1648 = vst.msk [vmem:[#allocation2 + $0x88] sm:$0xff] %vm1134_vm8, %v1555_v13  ;;  %v3567_v13 = vld [vmem:[#allocation2 + $0x58] sm:$0xff]  ;;  %v1723_v28 = vadd.f32 %v1722_v47, %v1721_v32 }
 0x206   : > { %v1835_v7 = vsel %vm1134_vm8, %v1790_v42, 0.0  ;;  %v1791_v45 = vmul.f32 %v3567_v13, %v3567_v13  ;;  %v1724_v60 = vsel %vm1134_vm8, %v3567_v13, 0.0 }
 0x207   : > { %v1836_v48 = vadd.f32 %v1835_v7, %v1834_v38 }
 0x208   : > { %v1837_v25 = vsel %vm1134_vm8, %v1791_v45, 0.0 }
 0x209   : > { %v1838_v46 = vadd.f32 %v1837_v25, %v1836_v48  ;;  %v3622_v57 = vld [vmem:[#allocation2 + $0x90] sm:$0xff] }
 0x20a   : > { %v3601_v24 = vld [vmem:[#allocation2 + $0x80] sm:$0xff]  ;;  %v1798_v32 = vmul.f32 %v3622_v57, %v3622_v57 }
 0x20b   : > { %v1840_v6 = vadd.f32 %v1839_v49, %v1838_v46  ;;  %v1796_v12 = vmul.f32 %v3601_v24, %v3601_v24  ;;  %v1734_v43 = vsel %vm1134_vm8, %v3601_v24, 0.0  ;;  %v3627_v42 = vld [vmem:[#allocation2 + $0x98] sm:$0xff] }
 0x20c   : > { %v3610_v58 = vld [vmem:[#allocation2 + $0x88] sm:$0xff]  ;;  %v1851_v45 = vsel %vm1134_vm8, %v1798_v32, 0.0  ;;  %v1799_v20 = vmul.f32 %v3627_v42, %v3627_v42 }
 0x20d   : > { %v1847_v15 = vsel %vm1134_vm8, %v1796_v12, 0.0  ;;  %v1797_v26 = vmul.f32 %v3610_v58, %v3610_v58  ;;  %v1736_v52 = vsel %vm1134_vm8, %v3610_v58, 0.0 }
 0x20e   : > { %v1853_v49 = vsel %vm1134_vm8, %v1799_v20, 0.0 }
 0x20f   : > { %v1849_v36 = vsel %vm1134_vm8, %v1797_v26, 0.0 }
 0x221   : > { %v2372_v19 = vpop.f32.mrb[0].mxu1 }
 0x222   : > { %1653 = vst.msk [vmem:[#allocation2 + $0xb0] sm:$0xff] %vm1134_vm8, %v2372_v19  ;;  %v1568_v22 = vpop.f32.mrb[1].mxu1  ;;  %v1725_v19 = vadd.f32 %v1724_v60, %v1723_v28  ;;  %v1738_v28 = vsel %vm1134_vm8, %v3622_v57, 0.0 }
 0x223   : > { %1651 = vst.msk [vmem:[#allocation2 + $0xa0] sm:$0xff] %vm1134_vm8, %v1568_v22  ;;  %v2373_v29 = vpop.f32.mrb[2].mxu1  ;;  %v1793_v22 = vmul.f32 %v3578_v14, %v3578_v14 }
 0x224   : > { %1654 = vst.msk [vmem:[#allocation2 + $0xb8] sm:$0xff] %vm1134_vm8, %v2373_v29  ;;  %v1571_v33 = vpop.f32.mrb[3].mxu1  ;;  %v1727_v29 = vadd.f32 %v1726_v61, %v1725_v19  ;;  %v1740_v19 = vsel %vm1134_vm8, %v3627_v42, 0.0 }
 0x225   : > { %1652 = vst.msk [vmem:[#allocation2 + $0xa8] sm:$0xff] %vm1134_vm8, %v1571_v33  ;;  %v1728_v33 = vsel %vm1134_vm8, %v3578_v14, 0.0  ;;  %v1841_v18 = vsel %vm1134_vm8, %v1793_v22, 0.0 }
 0x226   : > { %v1729_v56 = vadd.f32 %v1728_v33, %v1727_v29  ;;  %v1842_v16 = vadd.f32 %v1841_v18, %v1840_v6 }
 0x228   : > { %v1731_v31 = vadd.f32 %v1730_v51, %v1729_v56  ;;  %v1844_v9 = vadd.f32 %v1843_v50, %v1842_v16 }
 0x229   : > { %v3650_v33 = vld [vmem:[#allocation2 + $0xb0] sm:$0xff] }
 0x22a   : > { %v1733_v10 = vadd.f32 %v1732_v4, %v1731_v31  ;;  %v1846_v8 = vadd.f32 %v1845_v40, %v1844_v9  ;;  %v3629_v47 = vld [vmem:[#allocation2 + $0xa0] sm:$0xff]  ;;  %v1802_v51 = vmul.f32 %v3650_v33, %v3650_v33  ;;  %v1746_v9 = vsel %vm1134_vm8, %v3650_v33, 0.0 }
 0x22b   : > { %v1800_v48 = vmul.f32 %v3629_v47, %v3629_v47  ;;  %v3658_v50 = vld [vmem:[#allocation2 + $0xb8] sm:$0xff] }
 0x22c   : > { %v1735_v62 = vadd.f32 %v1734_v43, %v1733_v10  ;;  %v1848_v53 = vadd.f32 %v1847_v15, %v1846_v8  ;;  %v3638_v61 = vld [vmem:[#allocation2 + $0xa8] sm:$0xff]  ;;  %v1859_v43 = vsel %vm1134_vm8, %v1802_v51, 0.0  ;;  %v1803_v10 = vmul.f32 %v3658_v50, %v3658_v50 }
 0x22d   : > { %v1855_v22 = vsel %vm1134_vm8, %v1800_v48, 0.0 }
 0x22e   : > { %v1737_v39 = vadd.f32 %v1736_v52, %v1735_v62  ;;  %v1850_v38 = vadd.f32 %v1849_v36, %v1848_v53  ;;  %v1748_v62 = vsel %vm1134_vm8, %v3658_v50, 0.0  ;;  %v1861_v53 = vsel %vm1134_vm8, %v1803_v10, 0.0 }
 0x230   : > { %v1739_v7 = vadd.f32 %v1738_v28, %v1737_v39  ;;  %v1852_v60 = vadd.f32 %v1851_v45, %v1850_v38 }
 0x232   : > { %v1741_v25 = vadd.f32 %v1740_v19, %v1739_v7  ;;  %v1854_v46 = vadd.f32 %v1853_v49, %v1852_v60 }
 0x241   : > { %v2376_v11 = vpop.f32.mrb[4].mxu1 }
 0x242   : > { %1657 = vst.msk [vmem:[#allocation2 + $0xd0] sm:$0xff] %vm1134_vm8, %v2376_v11  ;;  %v1584_v0 = vpop.f32.mrb[5].mxu1  ;;  %v1742_v11 = vsel %vm1134_vm8, %v3629_v47, 0.0 }
 0x243   : > { %1655 = vst.msk [vmem:[#allocation2 + $0xc0] sm:$0xff] %vm1134_vm8, %v1584_v0  ;;  %v2377_v17 = vpop.f32.mrb[6].mxu1  ;;  %v1801_v0 = vmul.f32 %v3638_v61, %v3638_v61  ;;  %v1743_v29 = vadd.f32 %v1742_v11, %v1741_v25 }
 0x244   : > { %1658 = vst.msk [vmem:[#allocation2 + $0xd8] sm:$0xff] %vm1134_vm8, %v2377_v17  ;;  %v1587_v3 = vpop.f32.mrb[7].mxu1  ;;  %v1744_v17 = vsel %vm1134_vm8, %v3638_v61, 0.0 }
 0x245   : > { %1656 = vst.msk [vmem:[#allocation2 + $0xc8] sm:$0xff] %vm1134_vm8, %v1587_v3  ;;  %v1856_v3 = vadd.f32 %v1855_v22, %v1854_v46  ;;  %v1857_v18 = vsel %vm1134_vm8, %v1801_v0, 0.0  ;;  %v1745_v30 = vadd.f32 %v1744_v17, %v1743_v29 }
 0x247   : > { %v1858_v41 = vadd.f32 %v1857_v18, %v1856_v3  ;;  %v1747_v4 = vadd.f32 %v1746_v9, %v1745_v30 }
 0x249   : > { %v1860_v15 = vadd.f32 %v1859_v43, %v1858_v41  ;;  %v1749_v52 = vadd.f32 %v1748_v62, %v1747_v4  ;;  %v3682_v7 = vld [vmem:[#allocation2 + $0xd0] sm:$0xff] }
 0x24a   : > { %v3660_v12 = vld [vmem:[#allocation2 + $0xc0] sm:$0xff]  ;;  %v1806_v60 = vmul.f32 %v3682_v7, %v3682_v7  ;;  %v1754_v49 = vsel %vm1134_vm8, %v3682_v7, 0.0 }
 0x24b   : > { %v1804_v40 = vmul.f32 %v3660_v12, %v3660_v12  ;;  %v1750_v8 = vsel %vm1134_vm8, %v3660_v12, 0.0  ;;  %v1862_v38 = vadd.f32 %v1861_v53, %v1860_v15  ;;  %v3687_v19 = vld [vmem:[#allocation2 + $0xd8] sm:$0xff] }
 0x24c   : > { %v3670_v26 = vld [vmem:[#allocation2 + $0xc8] sm:$0xff]  ;;  %v1751_v32 = vadd.f32 %v1750_v8, %v1749_v52  ;;  %v1867_v0 = vsel %vm1134_vm8, %v1806_v60, 0.0  ;;  %v1807_v29 = vmul.f32 %v3687_v19, %v3687_v19 }
 0x24d   : > { %v1863_v36 = vsel %vm1134_vm8, %v1804_v40, 0.0  ;;  %v1805_v39 = vmul.f32 %v3670_v26, %v3670_v26  ;;  %v1752_v28 = vsel %vm1134_vm8, %v3670_v26, 0.0  ;;  %v1894_v8 = vld [vmem:[#allocation2 + $0x10] ss:$18 sm:$0xff] }
 0x24e   : > { %v1864_v45 = vadd.f32 %v1863_v36, %v1862_v38  ;;  %v1753_v48 = vadd.f32 %v1752_v28, %v1751_v32  ;;  %v1898_v36 = vld [vmem:[#allocation2 + $0x11] ss:$18 sm:$0xff] }
 0x24f   : > { %v1865_v20 = vsel %vm1134_vm8, %v1805_v39, 0.0 }
 0x250   : > { %v1866_v11 = vadd.f32 %v1865_v20, %v1864_v45  ;;  %v1755_v22 = vadd.f32 %v1754_v49, %v1753_v48  ;;  %v1921_v20 = vmul.f32 %v1894_v8, %v1894_v8 }
 0x252   : > { %v1868_v3 = vadd.f32 %v1867_v0, %v1866_v11  ;;  %v1933_v11 = vmul.f32 %v1898_v36, %v1898_v36 }
 0x261   : > { %v2380_v6 = vpop.f32.mrb[8].mxu1 }
 0x262   : > { %1661 = vst.msk [vmem:[#allocation2 + $0xf0] sm:$0xff] %vm1134_vm8, %v2380_v6  ;;  %v1600_v56 = vpop.f32.mrb[9].mxu1  ;;  %v1756_v6 = vsel %vm1134_vm8, %v3687_v19, 0.0 }
 0x263   : > { %1659 = vst.msk [vmem:[#allocation2 + $0xe0] sm:$0xff] %vm1134_vm8, %v1600_v56  ;;  %v2381_v16 = vpop.f32.mrb[10].mxu1  ;;  %v1757_v56 = vadd.f32 %v1756_v6, %v1755_v22  ;;  %v1911_v6 = vsel %vm1134_vm8, %v1898_v36, 0.0 }
 0x264   : > { %1662 = vst.msk [vmem:[#allocation2 + $0xf8] sm:$0xff] %vm1134_vm8, %v2381_v16  ;;  %v1603_v31 = vpop.f32.mrb[11].mxu1  ;;  %v1869_v16 = vsel %vm1134_vm8, %v1807_v29, 0.0 }
 0x265   : > { %1660 = vst.msk [vmem:[#allocation2 + $0xe8] sm:$0xff] %vm1134_vm8, %v1603_v31  ;;  %v1870_v41 = vadd.f32 %v1869_v16, %v1868_v3  ;;  %v1901_v3 = vsel %vm1134_vm8, %v1894_v8, 0.0 }
 0x269   : > { %v3710_v4 = vld [vmem:[#allocation2 + $0xf0] sm:$0xff] }
 0x26a   : > { %v3689_v25 = vld [vmem:[#allocation2 + $0xe0] sm:$0xff]  ;;  %v1810_v53 = vmul.f32 %v3710_v4, %v3710_v4  ;;  %v1762_v28 = vsel %vm1134_vm8, %v3710_v4, 0.0 }
 0x26b   : > { %v1808_v46 = vmul.f32 %v3689_v25, %v3689_v25  ;;  %v1758_v18 = vsel %vm1134_vm8, %v3689_v25, 0.0  ;;  %v3718_v32 = vld [vmem:[#allocation2 + $0xf8] sm:$0xff] }
 0x26c   : > { %v3698_v17 = vld [vmem:[#allocation2 + $0xe8] sm:$0xff]  ;;  %v1759_v31 = vadd.f32 %v1758_v18, %v1757_v56  ;;  %v1811_v48 = vmul.f32 %v3718_v32, %v3718_v32  ;;  %v1875_v60 = vsel %vm1134_vm8, %v1810_v53, 0.0  ;;  %v1764_v0 = vsel %vm1134_vm8, %v3718_v32, 0.0 }
 0x26d   : > { %v1809_v30 = vmul.f32 %v3698_v17, %v3698_v17  ;;  %v1871_v51 = vsel %vm1134_vm8, %v1808_v46, 0.0  ;;  %v1760_v9 = vsel %vm1134_vm8, %v3698_v17, 0.0  ;;  %v1923_v18 = vsel %vm1134_vm8, %v1921_v20, 0.0 }
 0x26e   : > { %v1872_v43 = vadd.f32 %v1871_v51, %v1870_v41  ;;  %v1761_v62 = vadd.f32 %v1760_v9, %v1759_v31  ;;  %v1877_v51 = vsel %vm1134_vm8, %v1811_v48, 0.0  ;;  %v1935_v31 = vsel %vm1134_vm8, %v1933_v11, 0.0 }
 0x26f   : > { %v1873_v40 = vsel %vm1134_vm8, %v1809_v30, 0.0 }
 0x270   : > { %v1874_v38 = vadd.f32 %v1873_v40, %v1872_v43  ;;  %v1763_v45 = vadd.f32 %v1762_v28, %v1761_v62 }
 0x272   : > { %v1876_v49 = vadd.f32 %v1875_v60, %v1874_v38  ;;  %v1765_v46 = vadd.f32 %v1764_v0, %v1763_v45 }
 0x274   : > { %v1878_v40 = vadd.f32 %v1877_v51, %v1876_v49 }
 0x27e   : > { %v2384_v10 = vpop.f32.mrb[12].mxu1 }
 0x27f   : > { %1665 = vst.msk [vmem:[#allocation2 + $0x110] sm:$0xff] %vm1134_vm8, %v2384_v10  ;;  %v1616_v15 = vpop.f32.mrb[13].mxu1 }
 0x280   : > { %1663 = vst.msk [vmem:[#allocation2 + $0x100] sm:$0xff] %vm1134_vm8, %v1616_v15  ;;  %v2385_v52 = vpop.f32.mrb[14].mxu1 }
 0x281   : > { %1666 = vst.msk [vmem:[#allocation2 + $0x118] sm:$0xff] %vm1134_vm8, %v2385_v52  ;;  %v1619_v39 = vpop.f32.mrb[15].mxu1 }
 0x282   : > { %1664 = vst.msk [vmem:[#allocation2 + $0x108] sm:$0xff] %vm1134_vm8, %v1619_v39 }
 0x286   : > { %v3726_v22 = vld [vmem:[#allocation2 + $0x110] sm:$0xff] }
 0x287   : > { %3932 = vst [vmem:[#allocation3_spill] sm:$0xff] %v3726_v22  ;;  %v3730_v29 = vld [vmem:[#allocation2 + $0x100] sm:$0xff]  ;;  %v1770_v43 = vsel %vm1134_vm8, %v3726_v22, 0.0  ;;  %v1814_v10 = vmul.f32 %v3726_v22, %v3726_v22 }
 0x288   : > { %v3735_v56 = vld [vmem:[#allocation2 + $0x118] sm:$0xff]  ;;  %v1766_v30 = vsel %vm1134_vm8, %v3730_v29, 0.0  ;;  %v1812_v16 = vmul.f32 %v3730_v29, %v3730_v29 }
 0x289   : > { %3933 = vst [vmem:[#allocation4_spill] sm:$0xff] %v3735_v56  ;;  %v3743_v41 = vld [vmem:[#allocation2 + $0x108] sm:$0xff]  ;;  %v1767_v9 = vadd.f32 %v1766_v30, %v1765_v46  ;;  %v1815_v38 = vmul.f32 %v3735_v56, %v3735_v56  ;;  %v1883_v51 = vsel %vm1134_vm8, %v1814_v10, 0.0 }
 0x28a   : > { %3934 = vst [vmem:[#allocation5_spill] sm:$0xff] %v3743_v41  ;;  %v1896_v15 = vld [vmem:[#allocation2 + $0xa0] ss:$18 sm:$0xff]  ;;  %v1768_v62 = vsel %vm1134_vm8, %v3743_v41, 0.0  ;;  %v1813_v8 = vmul.f32 %v3743_v41, %v3743_v41  ;;  %v1879_v52 = vsel %vm1134_vm8, %v1812_v16, 0.0  ;;  %v1772_v16 = vsel %vm1134_vm8, %v3735_v56, 0.0 }
 0x28b   : > { %v1900_v53 = vld [vmem:[#allocation2 + $0xa1] ss:$18 sm:$0xff]  ;;  %v1902_v36 = vsel %vm1134_vm8, %v1896_v15, 0.0  ;;  %v1769_v39 = vadd.f32 %v1768_v62, %v1767_v9  ;;  %v1880_v28 = vadd.f32 %v1879_v52, %v1878_v40  ;;  %v1922_v60 = vmul.f32 %v1896_v15, %v1896_v15 }
 0x28c   : > { %v1903_v45 = vadd.f32 %v1902_v36, %v1901_v3  ;;  %v1881_v20 = vsel %vm1134_vm8, %v1813_v8, 0.0  ;;  %v1912_v48 = vsel %vm1134_vm8, %v1900_v53, 0.0  ;;  %v1934_v11 = vmul.f32 %v1900_v53, %v1900_v53 }
 0x28d   : > { %v1771_v49 = vadd.f32 %v1770_v43, %v1769_v39  ;;  %v1882_v0 = vadd.f32 %v1881_v20, %v1880_v28  ;;  %v1913_v30 = vadd.f32 %v1912_v48, %v1911_v6  ;;  %v1924_v9 = vsel %vm1134_vm8, %v1922_v60, 0.0 }
 0x28e   : > { %v1904_v46 = vrot.slane %v1903_v45, 4  ;;  %v1936_v40 = vsel %vm1134_vm8, %v1934_v11, 0.0  ;;  %v1885_v15 = vsel %vm1134_vm8, %v1815_v38, 0.0  ;;  %v1925_v53 = vadd.f32 %v1924_v9, %v1923_v18 }
 0x28f   : > { %v1773_v3 = vadd.f32 %v1772_v16, %v1771_v49  ;;  %v1884_v62 = vadd.f32 %v1883_v51, %v1882_v0  ;;  %v1914_v52 = vrot.slane %v1913_v30, 4  ;;  %v1937_v43 = vadd.f32 %v1936_v40, %v1935_v31 }
 0x290   : > { %v1905_v8 = vadd.f32 %v1904_v46, %v1903_v45  ;;  %v1926_v20 = vrot.slane %v1925_v53, 4 }
 0x291   : > { %v1774_v36 = vrot.slane %v1773_v3, 4  ;;  %v1886_v39 = vadd.f32 %v1885_v15, %v1884_v62  ;;  %v1915_v28 = vadd.f32 %v1914_v52, %v1913_v30  ;;  %v1938_v48 = vrot.slane %v1937_v43, 4 }
 0x292   : > { %v1906_v6 = vrot.slane %v1905_v8, 2  ;;  %v1927_v41 = vadd.f32 %v1926_v20, %v1925_v53 }
 0x293   : > { %v1775_v56 = vadd.f32 %v1774_v36, %v1773_v3  ;;  %v1887_v10 = vrot.slane %v1886_v39, 4  ;;  %v1916_v60 = vrot.slane %v1915_v28, 2  ;;  %v1939_v11 = vadd.f32 %v1938_v48, %v1937_v43 }
 0x294   : > { %v1907_v22 = vadd.f32 %v1906_v6, %v1905_v8  ;;  %v1928_v46 = vrot.slane %v1927_v41, 2 }
 0x295   : > { %v1776_v49 = vrot.slane %v1775_v56, 2  ;;  %v1888_v0 = vadd.f32 %v1887_v10, %v1886_v39  ;;  %v1917_v45 = vadd.f32 %v1916_v60, %v1915_v28  ;;  %v1940_v16 = vrot.slane %v1939_v11, 2 }
 0x296   : > { %v1908_v31 = vrot.slane %v1907_v22, 1  ;;  %v1929_v51 = vadd.f32 %v1928_v46, %v1927_v41  ;;  %v1959_v46 = vlaneseq }
 0x297   : > { %v1777_v38 = vadd.f32 %v1776_v49, %v1775_v56  ;;  %v1889_v18 = vrot.slane %v1888_v0, 2  ;;  %v1941_v9 = vadd.f32 %v1940_v16, %v1939_v11  ;;  %v1918_v62 = vrot.slane %v1917_v45, 1 }
 0x298   : > { %v1930_v52 = vrot.slane %v1929_v51, 1  ;;  %v1909_v8 = vadd.f32 %v1908_v31, %v1907_v22  ;;  %v1960_v16 = vshrl.u32 %v1959_v46, 7  ;;  %v1952_v22 = vld [vmem:[%s3927_s2] sm:$0x3] }
 0x299   : > { %v1778_v40 = vrot.slane %v1777_v38, 1  ;;  %v1890_v30 = vadd.f32 %v1889_v18, %v1888_v0  ;;  %v1942_v36 = vrot.slane %v1941_v9, 1  ;;  %v1919_v6 = vadd.f32 %v1918_v62, %v1917_v45 }
 0x29a   : > { %v1931_v39 = vadd.f32 %v1930_v52, %v1929_v51  ;;  %v2001_v62 = vsub.s32 1, %v1960_v16 }
 0x29b   : > { %v1779_v3 = vadd.f32 %v1778_v40, %v1777_v38  ;;  %v1891_v15 = vrot.slane %v1890_v30, 1  ;;  %v1943_v48 = vadd.f32 %v1942_v36, %v1941_v9  ;;  %v1961_v38 = vsub.s32 0, %v1960_v16 }
 0x29d   : > { %v1892_v53 = vadd.f32 %v1891_v15, %v1890_v30  ;;  %v1910_v43 = vsub.f32 %v1779_v3, %v1909_v8 }
 0x29f   : > { %v1920_v28 = vsub.f32 %v1910_v43, %v1919_v6  ;;  %v1932_v20 = vsub.f32 %v1892_v53, %v1931_v39 }
 0x2a1   : > { %v1944_v56 = vsub.f32 %v1932_v20, %v1943_v48  ;;  %v1945_v10 = vmul.f32 0.00390625, %v1920_v28 }
 0x2a3   : > { %v1946_v60 = vmul.f32 0.00390625, %v1944_v56  ;;  %v1947_v41 = vmul.f32 %v1945_v10, %v1945_v10 }
 0x2a5   : > { %v1948_v11 = vsub.f32 %v1946_v60, %v1947_v41 }
 0x2a7   : > { %v1949_v49 = vmax.f32 %v1948_v11, 0.0 }
 0x2a9   : > { %v1950_v0 = vadd.f32 1e-05, %v1949_v49 }
 0x2ab   : > { %2444 = vrsqrt.f32 %v1950_v0 }
 0x2b5   : > { %v2445_v45 = vpop.eup %2444 }
 0x2b6   : > { %v1953_v18 = vmul.f32 %v2445_v45, %v1952_v22 }
 0x2b8   : > { %v1954_v31 = vmul.f32 %v1953_v18, %v1945_v10  ;;  %v1962_v51 = vrot.slane %v1953_v18, %v1961_v38 }
 0x2ba   : > { %v1956_v9 = vrot.slane %v1954_v31, 7  ;;  %v1963_v40 = vmul.f32 %v1962_v51, %v3491_v2  ;;  %v1964_v30 = vmul.f32 %v1962_v51, %v3489_v35  ;;  %v1965_v52 = vmul.f32 %v1962_v51, %v3499_v55 }
 0x2bb   : > { %v1966_v3 = vmul.f32 %v1962_v51, %v3507_v44  ;;  %v1967_v15 = vmul.f32 %v1962_v51, %v3509_v21  ;;  %v1968_v8 = vmul.f32 %v1962_v51, %v3519_v23  ;;  %v1969_v53 = vmul.f32 %v1962_v51, %v3534_v54 }
 0x2bc   : > { %v1958_v36 = vsub.f32 %v1952_v22, %v1956_v9  ;;  %v1970_v43 = vmul.f32 %v1962_v51, %v3539_v27  ;;  %v1971_v6 = vmul.f32 %v1962_v51, %v3541_v34  ;;  %v1972_v2 = vmul.f32 %v1962_v51, %v3550_v37 }
 0x2bd   : > { %v1973_v35 = vmul.f32 %v1962_v51, %v3562_v59  ;;  %v1974_v39 = vmul.f32 %v1962_v51, %v3567_v13  ;;  %v1975_v55 = vmul.f32 %v1962_v51, %v3569_v1  ;;  %v1976_v44 = vmul.f32 %v1962_v51, %v3578_v14 }
 0x2be   : > { %v1977_v21 = vmul.f32 %v1962_v51, %v3593_v5  ;;  %v1978_v23 = vmul.f32 %v1962_v51, %v3599_v63  ;;  %v1979_v54 = vmul.f32 %v1962_v51, %v3601_v24  ;;  %v1980_v27 = vmul.f32 %v1962_v51, %v3610_v58 }
 0x2bf   : > { %v1981_v34 = vmul.f32 %v1962_v51, %v3622_v57  ;;  %v1982_v37 = vmul.f32 %v1962_v51, %v3627_v42  ;;  %v1983_v59 = vmul.f32 %v1962_v51, %v3629_v47  ;;  %v1984_v13 = vmul.f32 %v1962_v51, %v3638_v61 }
 0x2c0   : > { %v1985_v1 = vmul.f32 %v1962_v51, %v3650_v33  ;;  %v1986_v14 = vmul.f32 %v1962_v51, %v3658_v50  ;;  %v1987_v5 = vmul.f32 %v1962_v51, %v3660_v12  ;;  %v1988_v63 = vmul.f32 %v1962_v51, %v3670_v26  ;;  %v3935_v50 = vld [vmem:[#allocation5_spill] sm:$0xff]  ;;  %v3936_v12 = vld [vmem:[#allocation3_spill] sm:$0xff]  ;;  %v3937_v26 = vld [vmem:[#allocation4_spill] sm:$0xff] }
 0x2c1   : > { %v1989_v24 = vmul.f32 %v1962_v51, %v3682_v7  ;;  %v1990_v58 = vmul.f32 %v1962_v51, %v3687_v19  ;;  %v1991_v57 = vmul.f32 %v1962_v51, %v3689_v25  ;;  %v1992_v42 = vmul.f32 %v1962_v51, %v3698_v17 }
 0x2c2   : > { %v1993_v47 = vmul.f32 %v1962_v51, %v3710_v4  ;;  %v1994_v61 = vmul.f32 %v1962_v51, %v3718_v32  ;;  %v2002_v28 = vrot.slane %v1958_v36, %v2001_v62  ;;  %v1995_v33 = vmul.f32 %v1962_v51, %v3730_v29 }
 0x2c3   : > { %v1996_v20 = vmul.f32 %v1962_v51, %v3935_v50  ;;  %v1997_v48 = vmul.f32 %v1962_v51, %v3936_v12  ;;  %v1998_v56 = vmul.f32 %v1962_v51, %v3937_v26 }
 0x2c4   : > { %v2003_v7 = vadd.f32 %v2002_v28, %v1963_v40  ;;  %v2004_v10 = vadd.f32 %v2002_v28, %v1964_v30  ;;  %v2005_v19 = vadd.f32 %v2002_v28, %v1965_v52  ;;  %v2006_v60 = vadd.f32 %v2002_v28, %v1966_v3 }
 0x2c5   : > { %v2007_v25 = vadd.f32 %v2002_v28, %v1967_v15  ;;  %v2008_v41 = vadd.f32 %v2002_v28, %v1968_v8  ;;  %v2009_v17 = vadd.f32 %v2002_v28, %v1969_v53  ;;  %v2010_v11 = vadd.f32 %v2002_v28, %v1970_v43 }
 0x2c6   : > { %v2011_v4 = vadd.f32 %v2002_v28, %v1971_v6  ;;  %v2012_v49 = vadd.f32 %v2002_v28, %v1972_v2  ;;  %v2013_v32 = vadd.f32 %v2002_v28, %v1973_v35  ;;  %v2014_v0 = vadd.f32 %v2002_v28, %v1974_v39 }
 0x2c7   : > { %v2015_v46 = vadd.f32 %v2002_v28, %v1975_v55  ;;  %v2016_v29 = vadd.f32 %v2002_v28, %v1976_v44  ;;  %v2017_v16 = vadd.f32 %v2002_v28, %v1977_v21  ;;  %v2018_v22 = vadd.f32 %v2002_v28, %v1978_v23 }
 0x2c8   : > { %v3804_v38 = vadd.f32 %v2002_v28, %v1979_v54  ;;  %v3806_v45 = vadd.f32 %v2002_v28, %v1980_v27  ;;  %v3808_v18 = vadd.f32 %v2002_v28, %v1981_v34  ;;  %v3810_v31 = vadd.f32 %v2002_v28, %v1982_v37 }
 0x2c9   : > { %v3812_v51 = vadd.f32 %v2002_v28, %v1983_v59  ;;  %v3814_v9 = vadd.f32 %v2002_v28, %v1984_v13  ;;  %v3816_v40 = vadd.f32 %v2002_v28, %v1985_v1  ;;  %v3818_v30 = vadd.f32 %v2002_v28, %v1986_v14 }
 0x2ca   : > { %v3820_v62 = vadd.f32 %v2002_v28, %v1987_v5  ;;  %v3822_v52 = vadd.f32 %v2002_v28, %v1988_v63  ;;  %v3824_v3 = vadd.f32 %v2002_v28, %v1989_v24  ;;  %v3826_v15 = vadd.f32 %v2002_v28, %v1990_v58 }
 0x2cb   : > { %v3828_v8 = vadd.f32 %v2002_v28, %v1991_v57  ;;  %v3830_v36 = vadd.f32 %v2002_v28, %v1992_v42  ;;  %v3832_v53 = vadd.f32 %v2002_v28, %v1993_v47  ;;  %v3834_v43 = vadd.f32 %v2002_v28, %v1994_v61 }
 0x2cc   : > { %v3836_v6 = vadd.f32 %v2002_v28, %v1995_v33  ;;  %v3838_v2 = vadd.f32 %v2002_v28, %v1996_v20  ;;  %v3840_v35 = vadd.f32 %v2002_v28, %v1997_v48  ;;  %v3842_v39 = vadd.f32 %v2002_v28, %v1998_v56 }
 0x2cd   : > { %v2039_v55 = vmax.f32 %v2003_v7, 0.0  ;;  %v2040_v44 = vmax.f32 %v2004_v10, 0.0  ;;  %v2041_v21 = vmax.f32 %v2005_v19, 0.0  ;;  %v2042_v23 = vmax.f32 %v2006_v60, 0.0 }
 0x2ce   : > { %v2043_v54 = vmax.f32 %v2007_v25, 0.0  ;;  %v2044_v27 = vmax.f32 %v2008_v41, 0.0  ;;  %v2045_v34 = vmax.f32 %v2009_v17, 0.0  ;;  %v2046_v37 = vmax.f32 %v2010_v11, 0.0 }
 0x2cf   : > { %v2047_v59 = vmax.f32 %v2011_v4, 0.0  ;;  %v2048_v13 = vmax.f32 %v2012_v49, 0.0  ;;  %v2049_v1 = vmax.f32 %v2013_v32, 0.0  ;;  %v2050_v14 = vmax.f32 %v2014_v0, 0.0  ;;  %2075 = vst.msk [vmem:[#allocation2] sm:$0xff] %vm1134_vm8, %v2039_v55  ;;  %2076 = vst.msk [vmem:[#allocation2 + $0x8] sm:$0xff] %vm1134_vm8, %v2040_v44 }
 0x2d0   : > { %2077 = vst.msk [vmem:[#allocation2 + $0x10] sm:$0xff] %vm1134_vm8, %v2041_v21  ;;  %2078 = vst.msk [vmem:[#allocation2 + $0x18] sm:$0xff] %vm1134_vm8, %v2042_v23  ;;  %v2051_v5 = vmax.f32 %v2015_v46, 0.0  ;;  %v2052_v63 = vmax.f32 %v2016_v29, 0.0  ;;  %v2053_v24 = vmax.f32 %v2017_v16, 0.0  ;;  %v2054_v58 = vmax.f32 %v2018_v22, 0.0 }
 0x2d1   : > { %2079 = vst.msk [vmem:[#allocation2 + $0x20] sm:$0xff] %vm1134_vm8, %v2043_v54  ;;  %2080 = vst.msk [vmem:[#allocation2 + $0x28] sm:$0xff] %vm1134_vm8, %v2044_v27  ;;  %v2055_v57 = vmax.f32 %v3804_v38, 0.0  ;;  %v2056_v42 = vmax.f32 %v3806_v45, 0.0  ;;  %v2057_v47 = vmax.f32 %v3808_v18, 0.0  ;;  %v2058_v61 = vmax.f32 %v3810_v31, 0.0 }
 0x2d2   : > { %2081 = vst.msk [vmem:[#allocation2 + $0x30] sm:$0xff] %vm1134_vm8, %v2045_v34  ;;  %2082 = vst.msk [vmem:[#allocation2 + $0x38] sm:$0xff] %vm1134_vm8, %v2046_v37  ;;  %v2059_v28 = vmax.f32 %v3812_v51, 0.0  ;;  %v2060_v33 = vmax.f32 %v3814_v9, 0.0  ;;  %v2061_v50 = vmax.f32 %v3816_v40, 0.0  ;;  %v2062_v20 = vmax.f32 %v3818_v30, 0.0 }
 0x2d3   : > { %2083 = vst.msk [vmem:[#allocation2 + $0x40] sm:$0xff] %vm1134_vm8, %v2047_v59  ;;  %2084 = vst.msk [vmem:[#allocation2 + $0x48] sm:$0xff] %vm1134_vm8, %v2048_v13  ;;  %v2063_v12 = vmax.f32 %v3820_v62, 0.0  ;;  %v2064_v48 = vmax.f32 %v3822_v52, 0.0  ;;  %v2065_v26 = vmax.f32 %v3824_v3, 0.0  ;;  %v2066_v56 = vmax.f32 %v3826_v15, 0.0 }
 0x2d4   : > { %2085 = vst.msk [vmem:[#allocation2 + $0x50] sm:$0xff] %vm1134_vm8, %v2049_v1  ;;  %2086 = vst.msk [vmem:[#allocation2 + $0x58] sm:$0xff] %vm1134_vm8, %v2050_v14  ;;  %v2067_v7 = vmax.f32 %v3828_v8, 0.0  ;;  %v2068_v10 = vmax.f32 %v3830_v36, 0.0  ;;  %v2069_v19 = vmax.f32 %v3832_v53, 0.0  ;;  %v2070_v60 = vmax.f32 %v3834_v43, 0.0 }
 0x2d5   : > { %2087 = vst.msk [vmem:[#allocation2 + $0x60] sm:$0xff] %vm1134_vm8, %v2051_v5  ;;  %2088 = vst.msk [vmem:[#allocation2 + $0x68] sm:$0xff] %vm1134_vm8, %v2052_v63  ;;  %v2071_v25 = vmax.f32 %v3836_v6, 0.0  ;;  %v2072_v41 = vmax.f32 %v3838_v2, 0.0  ;;  %v2073_v17 = vmax.f32 %v3840_v35, 0.0  ;;  %v2074_v11 = vmax.f32 %v3842_v39, 0.0 }
 0x2d6   : > { %2089 = vst.msk [vmem:[#allocation2 + $0x70] sm:$0xff] %vm1134_vm8, %v2053_v24  ;;  %2090 = vst.msk [vmem:[#allocation2 + $0x78] sm:$0xff] %vm1134_vm8, %v2054_v58  ;;  %v2111_v4 = vld [vmem:[#allocation2] ss:$2 sm:$0xff]  ;;  %v2113_v49 = vld [vmem:[#allocation2 + $0x1] ss:$2 sm:$0xff] }
 0x2d7   : > { %2091 = vst.msk [vmem:[#allocation2 + $0x80] sm:$0xff] %vm1134_vm8, %v2055_v57  ;;  %2092 = vst.msk [vmem:[#allocation2 + $0x88] sm:$0xff] %vm1134_vm8, %v2056_v42  ;;  %v2114_v32 = vadd.f32 %v2113_v49, %v2111_v4 }
 0x2d8   : > { %2093 = vst.msk [vmem:[#allocation2 + $0x90] sm:$0xff] %vm1134_vm8, %v2057_v47  ;;  %2094 = vst.msk [vmem:[#allocation2 + $0x98] sm:$0xff] %vm1134_vm8, %v2058_v61  ;;  %v2116_v46 = vld [vmem:[#allocation2 + $0x12] ss:$2 sm:$0xff]  ;;  %v2119_v22 = vld [vmem:[#allocation2 + $0x13] ss:$2 sm:$0xff] }
 0x2d9   : > { %2095 = vst.msk [vmem:[#allocation2 + $0xa0] sm:$0xff] %vm1134_vm8, %v2059_v28  ;;  %2096 = vst.msk [vmem:[#allocation2 + $0xa8] sm:$0xff] %vm1134_vm8, %v2060_v33  ;;  %v2123_v0 = vld [vmem:[#allocation2 + $0x24] ss:$2 sm:$0xff]  ;;  %v2125_v29 = vld [vmem:[#allocation2 + $0x25] ss:$2 sm:$0xff]  ;;  %v2117_v16 = vadd.f32 %v2116_v46, %v2114_v32 }
 0x2da   : > { %2097 = vst.msk [vmem:[#allocation2 + $0xb0] sm:$0xff] %vm1134_vm8, %v2061_v50  ;;  %2098 = vst.msk [vmem:[#allocation2 + $0xb8] sm:$0xff] %vm1134_vm8, %v2062_v20  ;;  %v2126_v38 = vadd.f32 %v2125_v29, %v2123_v0  ;;  %v2128_v31 = vld [vmem:[#allocation2 + $0x36] ss:$2 sm:$0xff]  ;;  %v2131_v52 = vld [vmem:[#allocation2 + $0x37] ss:$2 sm:$0xff] }
 0x2db   : > { %2099 = vst.msk [vmem:[#allocation2 + $0xc0] sm:$0xff] %vm1134_vm8, %v2063_v12  ;;  %2100 = vst.msk [vmem:[#allocation2 + $0xc8] sm:$0xff] %vm1134_vm8, %v2064_v48  ;;  %v2135_v45 = vld [vmem:[#allocation2 + $0x48] ss:$2 sm:$0xff]  ;;  %v2137_v18 = vld [vmem:[#allocation2 + $0x49] ss:$2 sm:$0xff]  ;;  %v2120_v30 = vadd.f32 %v2119_v22, %v2117_v16 }
 0x2dc   : > { %2101 = vst.msk [vmem:[#allocation2 + $0xd0] sm:$0xff] %vm1134_vm8, %v2065_v26  ;;  %2102 = vst.msk [vmem:[#allocation2 + $0xd8] sm:$0xff] %vm1134_vm8, %v2066_v56  ;;  %v2138_v51 = vadd.f32 %v2137_v18, %v2135_v45  ;;  %v2129_v62 = vadd.f32 %v2128_v31, %v2126_v38  ;;  %v2140_v3 = vld [vmem:[#allocation2 + $0x5a] ss:$2 sm:$0xff]  ;;  %v2143_v53 = vld [vmem:[#allocation2 + $0x5b] ss:$2 sm:$0xff] }
 0x2dd   : > { %2103 = vst.msk [vmem:[#allocation2 + $0xe0] sm:$0xff] %vm1134_vm8, %v2067_v7  ;;  %2104 = vst.msk [vmem:[#allocation2 + $0xe8] sm:$0xff] %vm1134_vm8, %v2068_v10  ;;  %v2147_v9 = vld [vmem:[#allocation2 + $0x6c] ss:$2 sm:$0xff]  ;;  %v2149_v40 = vld [vmem:[#allocation2 + $0x6d] ss:$2 sm:$0xff] }
 0x2de   : > { %2105 = vst.msk [vmem:[#allocation2 + $0xf0] sm:$0xff] %vm1134_vm8, %v2069_v19  ;;  %2106 = vst.msk [vmem:[#allocation2 + $0xf8] sm:$0xff] %vm1134_vm8, %v2070_v60  ;;  %v2150_v15 = vadd.f32 %v2149_v40, %v2147_v9  ;;  %v2141_v36 = vadd.f32 %v2140_v3, %v2138_v51  ;;  %v2152_v43 = vld [vmem:[#allocation2 + $0x7e] ss:$2 sm:$0xff]  ;;  %v2132_v2 = vadd.f32 %v2131_v52, %v2129_v62  ;;  %v2155_v39 = vld [vmem:[#allocation2 + $0x7f] ss:$2 sm:$0xff] }
 0x2df   : > { %2107 = vst.msk [vmem:[#allocation2 + $0x100] sm:$0xff] %vm1134_vm8, %v2071_v25  ;;  %2108 = vst.msk [vmem:[#allocation2 + $0x108] sm:$0xff] %vm1134_vm8, %v2072_v41  ;;  %v2159_v8 = vld [vmem:[#allocation2 + $0x90] ss:$2 sm:$0xff]  ;;  %v2161_v6 = vld [vmem:[#allocation2 + $0x91] ss:$2 sm:$0xff] }
 0x2e0   : > { %2109 = vst.msk [vmem:[#allocation2 + $0x110] sm:$0xff] %vm1134_vm8, %v2073_v17  ;;  %2110 = vst.msk [vmem:[#allocation2 + $0x118] sm:$0xff] %vm1134_vm8, %v2074_v11  ;;  %v2153_v35 = vadd.f32 %v2152_v43, %v2150_v15  ;;  %v2162_v55 = vadd.f32 %v2161_v6, %v2159_v8  ;;  %v2144_v23 = vadd.f32 %v2143_v53, %v2141_v36 }
 0x2e1   : > { %2121 = vst.msk [vmem:[%s3904_s10] sm:$0xff] %vm1134_vm8, %v2120_v30  ;;  %v2164_v54 = vld [vmem:[#allocation2 + $0xa2] ss:$2 sm:$0xff]  ;;  %2133 = vst.msk [vmem:[%s3904_s10 + $0x8] sm:$0xff] %vm1134_vm8, %v2132_v2  ;;  %v2167_v63 = vld [vmem:[#allocation2 + $0xa3] ss:$2 sm:$0xff] }
 0x2e2   : > { %v2171_v44 = vld [vmem:[#allocation2 + $0xb4] ss:$2 sm:$0xff]  ;;  %v2173_v21 = vld [vmem:[#allocation2 + $0xb5] ss:$2 sm:$0xff]  ;;  %v2156_v59 = vadd.f32 %v2155_v39, %v2153_v35  ;;  %v2165_v13 = vadd.f32 %v2164_v54, %v2162_v55  ;;  %2145 = vst.msk [vmem:[%s3904_s10 + $0x10] sm:$0xff] %vm1134_vm8, %v2144_v23 }
 0x2e3   : > { %v2174_v27 = vadd.f32 %v2173_v21, %v2171_v44  ;;  %v2176_v1 = vld [vmem:[#allocation2 + $0xc6] ss:$2 sm:$0xff]  ;;  %v2179_v47 = vld [vmem:[#allocation2 + $0xc7] ss:$2 sm:$0xff] }
 0x2e4   : > { %v2183_v34 = vld [vmem:[#allocation2 + $0xd8] ss:$2 sm:$0xff]  ;;  %v2185_v37 = vld [vmem:[#allocation2 + $0xd9] ss:$2 sm:$0xff]  ;;  %2157 = vst.msk [vmem:[%s3904_s10 + $0x18] sm:$0xff] %vm1134_vm8, %v2156_v59  ;;  %v2168_v42 = vadd.f32 %v2167_v63, %v2165_v13 }
 0x2e5   : > { %v2186_v14 = vadd.f32 %v2185_v37, %v2183_v34  ;;  %v2177_v24 = vadd.f32 %v2176_v1, %v2174_v27  ;;  %v2188_v58 = vld [vmem:[#allocation2 + $0xea] ss:$2 sm:$0xff]  ;;  %v2191_v50 = vld [vmem:[#allocation2 + $0xeb] ss:$2 sm:$0xff] }
 0x2e6   : > { %v2195_v5 = vld [vmem:[#allocation2 + $0xfc] ss:$2 sm:$0xff]  ;;  %v2197_v57 = vld [vmem:[#allocation2 + $0xfd] ss:$2 sm:$0xff]  ;;  %2169 = vst.msk [vmem:[%s3904_s10 + $0x20] sm:$0xff] %vm1134_vm8, %v2168_v42 }
 0x2e7   : > { %v2189_v61 = vadd.f32 %v2188_v58, %v2186_v14  ;;  %v2198_v28 = vadd.f32 %v2197_v57, %v2195_v5  ;;  %v2180_v33 = vadd.f32 %v2179_v47, %v2177_v24  ;;  %v2200_v20 = vld [vmem:[#allocation2 + $0x10e] ss:$2 sm:$0xff]  ;;  %v2203_v26 = vld [vmem:[#allocation2 + $0x10f] ss:$2 sm:$0xff] }
 0x2e9   : > { %v2192_v12 = vadd.f32 %v2191_v50, %v2189_v61  ;;  %v2201_v48 = vadd.f32 %v2200_v20, %v2198_v28  ;;  %2181 = vst.msk [vmem:[%s3904_s10 + $0x28] sm:$0xff] %vm1134_vm8, %v2180_v33 }
 0x2eb   : > { %2193 = vst.msk [vmem:[%s3904_s10 + $0x30] sm:$0xff] %vm1134_vm8, %v2192_v12  ;;  %v2204_v56 = vadd.f32 %v2203_v26, %v2201_v48 }
 0x2ed   : > { %2205 = vst.msk [vmem:[%s3904_s10 + $0x38] sm:$0xff] %vm1134_vm8, %v2204_v56 }
 0x2ee PF: > { %s13_s12 = sadd.s32 1, %s2453_s12  }
 0x2ef   : > { %p10_p4 = scmp.ge.s32.totalorder %s13_s12, 4  }
 0x2f1   :  { %12 = sbr.rel (!%p10_p4) target bundleno = 1 (0x1), region = 97 }

</bundles_post_ra>
